<compile_context>
chip_gen: v7x
topology: tpu7x:2x2x1
jax: 0.10.0
libtpu: 0.0.40
codegen_flags: <defaults>
</compile_context>

<pallas_src>
import functools

import jax
import jax.numpy as jnp
import numpy as np
from jax import lax
from jax.experimental import pallas as pl
from jax.experimental.pallas import tpu as pltpu


def _lstm_kernel(x_ref, len_ref, w_in_ref, w_h_ref, b_ref,
                 out_ref, h_out_ref, c_out_ref,
                 proj_sc, h_sc, c_sc, *, hidden_size, block_t):
    H = hidden_size
    TT = block_t
    B = h_sc.shape[0]
    tb = pl.program_id(0)

    # Zero-init the carried state on the first time block.
    @pl.when(tb == 0)
    def _():
        h_sc[...] = jnp.zeros_like(h_sc)
        c_sc[...] = jnp.zeros_like(c_sc)

    # ---- Hoisted, time-parallel input projection for the whole block ----
    # One big MXU matmul with M = TT*B instead of TT tiny matmuls on the serial path.
    proj_sc[...] = (
        jnp.dot(x_ref[...], w_in_ref[...], preferred_element_type=jnp.float32)
        + b_ref[...])                                         # (TT*B, 4H) f32

    lengths = len_ref[...]                                    # (B, 1) int32
    t0 = tb * TT

    # ---- Serial recurrence over the TT timesteps of this block ----
    def step(t, carry):
        h_prev, c_prev = carry                                # (B, H) f32, in vregs
        rec = jnp.dot(h_prev.astype(jnp.bfloat16), w_h_ref[...],
                      preferred_element_type=jnp.float32)     # (B, 4H) f32
        row0 = pl.multiple_of(t * B, B)
        gates = proj_sc[pl.ds(row0, B), :] + rec              # (B, 4H)

        i_g = jax.nn.sigmoid(gates[:, 0 * H:1 * H])
        f_g = jax.nn.sigmoid(gates[:, 1 * H:2 * H])
        g_g = jnp.tanh(gates[:, 2 * H:3 * H])
        o_g = jax.nn.sigmoid(gates[:, 3 * H:4 * H])

        c_new = i_g * g_g + f_g * c_prev
        h_new = o_g * jnp.tanh(c_new)

        # Row b is active iff global timestep < length[b]; inactive rows keep their
        # previous state and emit 0 (matches the PackedSequence masking).
        mask = lengths > (t0 + t)                             # (B, 1) bool
        c_upd = jnp.where(mask, c_new, c_prev)
        h_upd = jnp.where(mask, h_new, h_prev)
        out_ref[t] = jnp.where(mask, h_new, 0.0).astype(out_ref.dtype)
        return h_upd, c_upd

    h_fin, c_fin = lax.fori_loop(0, TT, step, (h_sc[...], c_sc[...]),
                                 unroll=True)
    h_sc[...] = h_fin
    c_sc[...] = c_fin

    # Final state is emitted once, on the last time block.
    @pl.when(tb == pl.num_programs(0) - 1)
    def _():
        h_out_ref[...] = h_fin.astype(h_out_ref.dtype)
        c_out_ref[...] = c_fin.astype(c_out_ref.dtype)


def ma_lstm_cell_forward(x_tbi, lengths, w_in, w_h, bias, *, block_t=8):
    """x_tbi: (T, B, I) f32 time-major padded sequence, lengths: (B,) int,
    w_in: (I, 4H), w_h: (H, 4H), bias: (4H,).
    Returns (out (T, B, H), (h (1, B, H), c (1, B, H)))."""
    T, B, I = x_tbi.shape
    H = w_h.shape[0]
    TT = int(max(1, min(block_t, T)))
    n_blk = int(pl.cdiv(T, TT))
    T_pad = n_blk * TT
    if T_pad != T:
        # Padded timesteps are fully masked off in-kernel (t >= length for every row).
        x_tbi = jnp.pad(x_tbi, ((0, T_pad - T), (0, 0), (0, 0)))

    # bf16 feeds for the MXU; flatten (T, B, I) -> (T*B, I) so the in-kernel hoisted
    # projection needs no reshape (a leading-dim merge, not an HBM transpose).
    x_flat = x_tbi.reshape(T_pad * B, I).astype(jnp.bfloat16)
    w_in_b = w_in.astype(jnp.bfloat16)
    w_h_b = w_h.astype(jnp.bfloat16)
    b_row = bias.reshape(1, 4 * H).astype(jnp.float32)
    len_col = lengths.reshape(B, 1).astype(jnp.int32)

    kernel = functools.partial(_lstm_kernel, hidden_size=H, block_t=TT)
    invariant = dict(pipeline_mode=pl.Buffered(1))   # single-buffer loop invariants

    out_tbh, h_fin, c_fin = pl.pallas_call(
        kernel,
        out_shape=(
            jax.ShapeDtypeStruct((T_pad, B, H), jnp.float32),
            jax.ShapeDtypeStruct((B, H), jnp.float32),
            jax.ShapeDtypeStruct((B, H), jnp.float32),
        ),
        grid_spec=pltpu.PrefetchScalarGridSpec(
            num_scalar_prefetch=0,
            grid=(n_blk,),
            in_specs=[
                pl.BlockSpec((TT * B, I), lambda tb: (tb, 0)),             # x time block
                pl.BlockSpec((B, 1), lambda tb: (0, 0), **invariant),      # lengths
                pl.BlockSpec((I, 4 * H), lambda tb: (0, 0), **invariant),  # W_in
                pl.BlockSpec((H, 4 * H), lambda tb: (0, 0), **invariant),  # W_h
                pl.BlockSpec((1, 4 * H), lambda tb: (0, 0), **invariant),  # bias
            ],
            out_specs=[
                pl.BlockSpec((TT, B, H), lambda tb: (tb, 0, 0)),           # per-step outputs
                pl.BlockSpec((B, H), lambda tb: (0, 0)),                   # final h
                pl.BlockSpec((B, H), lambda tb: (0, 0)),                   # final c
            ],
            scratch_shapes=[
                pltpu.VMEM((TT * B, 4 * H), jnp.float32),                  # hoisted projection
                pltpu.VMEM((B, H), jnp.float32),                           # carried h
                pltpu.VMEM((B, H), jnp.float32),                           # carried c
            ],
        ),
        compiler_params=pltpu.CompilerParams(
            dimension_semantics=("arbitrary",),        # time recurrence is serial
            vmem_limit_bytes=32 * 1024 * 1024,         # explicit budget (v7x-safe headroom)
        ),
    )(x_flat, len_col, w_in_b, w_h_b, b_row)

    if T_pad != T:
        out_tbh = out_tbh[:T]
    return out_tbh, (h_fin[None], c_fin[None])


def _reference_forward(x_tbi, lengths, w_in, w_h, bias, *, emulate_bf16=False):
    """Pure-JAX reference replicating the PyTorch loop (eval mode, time-major).
    With emulate_bf16=True it mimics the kernel's bf16 operand casts (f32 accum)."""
    T, B, I = x_tbi.shape
    H = w_h.shape[0]
    if emulate_bf16:
        x_c = x_tbi.astype(jnp.bfloat16)
        w_in_c = w_in.astype(jnp.bfloat16)
        w_h_c = w_h.astype(jnp.bfloat16)
        cast_h = lambda a: a.astype(jnp.bfloat16)
    else:
        x_c, w_in_c, w_h_c = x_tbi, w_in, w_h
        cast_h = lambda a: a
    h = jnp.zeros((B, H), jnp.float32)
    c = jnp.zeros((B, H), jnp.float32)
    outs = []
    for t in range(T):
        gates = (jnp.dot(x_c[t], w_in_c, preferred_element_type=jnp.float32)
                 + jnp.dot(cast_h(h), w_h_c, preferred_element_type=jnp.float32)
                 + bias[None])
        i_g = jax.nn.sigmoid(gates[:, 0 * H:1 * H])
        f_g = jax.nn.sigmoid(gates[:, 1 * H:2 * H])
        g_g = jnp.tanh(gates[:, 2 * H:3 * H])
        o_g = jnp.tanh(gates[:, 3 * H:4 * H]) * 0.0 + jax.nn.sigmoid(gates[:, 3 * H:4 * H])
        c_new = i_g * g_g + f_g * c
        h_new = o_g * jnp.tanh(c_new)
        mask = (lengths > t)[:, None]
        c = jnp.where(mask, c_new, c)
        h = jnp.where(mask, h_new, h)
        outs.append(jnp.where(mask, h_new, 0.0))
    return jnp.stack(outs, axis=0), (h[None], c[None])


if __name__ == "__main__":
    # Small shapes consistent with the module: batch=8, seq=8, input=32, hidden=32.
    B, T, I, H = 8, 8, 32, 32

    key = jax.random.PRNGKey(0)
    k_x, k_win, k_wh = jax.random.split(key, 3)

    # Parameter init mirroring reset_parameters(): uniform(-stdv, stdv) weights,
    # biases zero except the forget-gate bias = 1.0.
    stdv = 1.0 / np.sqrt(H)
    w_in = jax.random.uniform(k_win, (I, 4 * H), jnp.float32, -stdv, stdv)
    w_h = jax.random.uniform(k_wh, (H, 4 * H), jnp.float32, -stdv, stdv)
    bias = jnp.concatenate([
        jnp.zeros((H,), jnp.float32),          # input gate bias
        jnp.ones((H,), jnp.float32),           # forget gate bias = 1.0
        jnp.zeros((H,), jnp.float32),          # memory init bias
        jnp.zeros((H,), jnp.float32),          # output gate bias
    ])

    x = jax.random.normal(k_x, (T, B, I), jnp.float32)          # time-major
    # lengths sorted descending, as produced by pack_padded_sequence.
    lengths = jnp.array([8, 8, 7, 6, 5, 3, 2, 1], dtype=jnp.int32)

    out, (h_fin, c_fin) = ma_lstm_cell_forward(x, lengths, w_in, w_h, bias)
    out = jax.block_until_ready(out)
    h_fin = jax.block_until_ready(h_fin)
    c_fin = jax.block_until_ready(c_fin)

    # Tight check against a reference that emulates the kernel's bf16 numerics
    # (validates masking / gate wiring / recurrence exactly).
    q_out, (q_h, q_c) = _reference_forward(x, lengths, w_in, w_h, bias, emulate_bf16=True)
    np.testing.assert_allclose(np.asarray(out), np.asarray(q_out), rtol=5e-3, atol=5e-3)
    np.testing.assert_allclose(np.asarray(h_fin), np.asarray(q_h), rtol=5e-3, atol=5e-3)
    np.testing.assert_allclose(np.asarray(c_fin), np.asarray(q_c), rtol=5e-3, atol=5e-3)

    # Fidelity check against the full-f32 module semantics (bf16 operands -> looser tol).
    r_out, (r_h, r_c) = _reference_forward(x, lengths, w_in, w_h, bias, emulate_bf16=False)
    np.testing.assert_allclose(np.asarray(out), np.asarray(r_out), rtol=5e-2, atol=5e-2)
    np.testing.assert_allclose(np.asarray(h_fin), np.asarray(r_h), rtol=5e-2, atol=5e-2)
    np.testing.assert_allclose(np.asarray(c_fin), np.asarray(r_c), rtol=5e-2, atol=5e-2)

    print("KERNEL_OK")
</pallas_src>

<mosaic_0001>
module attributes {stable_mosaic.version = 11 : i64} {
  func.func @_lstm_kernel(%arg0: i32, %arg1: memref<64x32xbf16, #tpu.memory_space<vmem>>, %arg2: memref<8x1xi32, #tpu.memory_space<vmem>>, %arg3: memref<32x128xbf16, #tpu.memory_space<vmem>>, %arg4: memref<32x128xbf16, #tpu.memory_space<vmem>>, %arg5: memref<1x128xf32, #tpu.memory_space<vmem>>, %arg6: memref<8x8x32xf32, #tpu.memory_space<vmem>>, %arg7: memref<8x32xf32, #tpu.memory_space<vmem>>, %arg8: memref<8x32xf32, #tpu.memory_space<vmem>>, %arg9: memref<64x128xf32, #tpu.memory_space<vmem>>, %arg10: memref<8x32xf32, #tpu.memory_space<vmem>>, %arg11: memref<8x32xf32, #tpu.memory_space<vmem>>) attributes {dimension_semantics = [#tpu.dimension_semantics<arbitrary>], iteration_bounds = array<i64: 1>, scalar_prefetch = 0 : i64, scratch_operands = 3 : i64, tpu.core_type = #tpu.core_type<tc>, window_params = [{transform_indices = @transform_0, window_bounds = array<i64: 64, 32>}, {pipeline_mode = #tpu.pipeline_mode<synchronous>, transform_indices = @transform_1, window_bounds = array<i64: 8, 1>}, {pipeline_mode = #tpu.pipeline_mode<synchronous>, transform_indices = @transform_2, window_bounds = array<i64: 32, 128>}, {pipeline_mode = #tpu.pipeline_mode<synchronous>, transform_indices = @transform_3, window_bounds = array<i64: 32, 128>}, {pipeline_mode = #tpu.pipeline_mode<synchronous>, transform_indices = @transform_4, window_bounds = array<i64: 1, 128>}, {transform_indices = @transform_5, window_bounds = array<i64: 8, 8, 32>}, {pipeline_mode = #tpu.pipeline_mode<synchronous>, transform_indices = @transform_6, window_bounds = array<i64: 8, 32>}, {pipeline_mode = #tpu.pipeline_mode<synchronous>, transform_indices = @transform_7, window_bounds = array<i64: 8, 32>}]} {
    %c0_i32 = arith.constant 0 : i32
    %0 = arith.cmpi eq, %arg0, %c0_i32 : i32
    %1 = arith.extui %0 : i1 to i32
    %c0_i32_0 = arith.constant 0 : i32
    %2 = arith.cmpi ne, %1, %c0_i32_0 : i32
    scf.if %2 {
      %cst_110 = arith.constant 0.000000e+00 : f32
      %419 = vector.broadcast %cst_110 : f32 to vector<8x32xf32>
      %c0_111 = arith.constant 0 : index
      %c0_112 = arith.constant 0 : index
      %420 = vector.load %arg10[%c0_111, %c0_112] : memref<8x32xf32, #tpu.memory_space<vmem>>, vector<8x32xf32>
      tpu.vector_store %arg10[%c0_111, %c0_112], %419 {strides = array<i32>} : memref<8x32xf32, #tpu.memory_space<vmem>>, vector<8x32xf32>,
      %cst_113 = arith.constant 0.000000e+00 : f32
      %421 = vector.broadcast %cst_113 : f32 to vector<8x32xf32>
      %c0_114 = arith.constant 0 : index
      %c0_115 = arith.constant 0 : index
      %422 = vector.load %arg11[%c0_114, %c0_115] : memref<8x32xf32, #tpu.memory_space<vmem>>, vector<8x32xf32>
      tpu.vector_store %arg11[%c0_114, %c0_115], %421 {strides = array<i32>} : memref<8x32xf32, #tpu.memory_space<vmem>>, vector<8x32xf32>,
    } else {
    }
    %c0 = arith.constant 0 : index
    %c0_1 = arith.constant 0 : index
    %3 = vector.load %arg1[%c0, %c0_1] : memref<64x32xbf16, #tpu.memory_space<vmem>>, vector<64x32xbf16>
    %c0_2 = arith.constant 0 : index
    %c0_3 = arith.constant 0 : index
    %4 = vector.load %arg3[%c0_2, %c0_3] : memref<32x128xbf16, #tpu.memory_space<vmem>>, vector<32x128xbf16>
    %cst = arith.constant dense<0.000000e+00> : vector<64x128xf32>
    %5 = tpu.matmul %3, %4, %cst {dimension_numbers = #tpu.dot_dimension_numbers<[1], [0], [0], [1], [0, 0, 1, 1], [], []>} : vector<64x32xbf16>, vector<32x128xbf16>, vector<64x128xf32> -> vector<64x128xf32>
    %c0_4 = arith.constant 0 : index
    %c0_5 = arith.constant 0 : index
    %6 = vector.load %arg5[%c0_4, %c0_5] : memref<1x128xf32, #tpu.memory_space<vmem>>, vector<1x128xf32>
    %7 = vector.broadcast %6 : vector<1x128xf32> to vector<64x128xf32>
    %8 = arith.addf %5, %7 : vector<64x128xf32>
    %c0_6 = arith.constant 0 : index
    %c0_7 = arith.constant 0 : index
    %9 = vector.load %arg9[%c0_6, %c0_7] : memref<64x128xf32, #tpu.memory_space<vmem>>, vector<64x128xf32>
    tpu.vector_store %arg9[%c0_6, %c0_7], %8 {strides = array<i32>} : memref<64x128xf32, #tpu.memory_space<vmem>>, vector<64x128xf32>,
    %c0_8 = arith.constant 0 : index
    %c0_9 = arith.constant 0 : index
    %10 = vector.load %arg2[%c0_8, %c0_9] : memref<8x1xi32, #tpu.memory_space<vmem>>, vector<8x1xi32>
    %c8_i32 = arith.constant 8 : i32
    %11 = arith.muli %arg0, %c8_i32 : i32
    %c0_10 = arith.constant 0 : index
    %c0_11 = arith.constant 0 : index
    %12 = vector.load %arg10[%c0_10, %c0_11] : memref<8x32xf32, #tpu.memory_space<vmem>>, vector<8x32xf32>
    %c0_12 = arith.constant 0 : index
    %c0_13 = arith.constant 0 : index
    %13 = vector.load %arg11[%c0_12, %c0_13] : memref<8x32xf32, #tpu.memory_space<vmem>>, vector<8x32xf32>
    %c0_i32_14 = arith.constant 0 : i32
    %14 = arith.truncf %12 : vector<8x32xf32> to vector<8x32xbf16>
    %c0_15 = arith.constant 0 : index
    %c0_16 = arith.constant 0 : index
    %15 = vector.load %arg4[%c0_15, %c0_16] : memref<32x128xbf16, #tpu.memory_space<vmem>>, vector<32x128xbf16>
    %cst_17 = arith.constant dense<0.000000e+00> : vector<8x128xf32>
    %16 = tpu.matmul %14, %15, %cst_17 {dimension_numbers = #tpu.dot_dimension_numbers<[1], [0], [0], [1], [0, 0, 1, 1], [], []>} : vector<8x32xbf16>, vector<32x128xbf16>, vector<8x128xf32> -> vector<8x128xf32>
    %c8_i32_18 = arith.constant 8 : i32
    %17 = arith.muli %c0_i32_14, %c8_i32_18 : i32
    %18 = tpu.assume_multiple %17, 8 : i32
    %19 = arith.index_cast %18 : i32 to index
    %c0_19 = arith.constant 0 : index
    %20 = vector.load %arg9[%19, %c0_19] : memref<64x128xf32, #tpu.memory_space<vmem>>, vector<8x128xf32>
    %21 = arith.addf %20, %16 : vector<8x128xf32>
    %22 = vector.extract_strided_slice %21 {offsets = [0, 0], sizes = [8, 32], strides = [1, 1]} : vector<8x128xf32> to vector<8x32xf32>
    %23 = arith.negf %22 : vector<8x32xf32>
    %24 = math.exp %23 : vector<8x32xf32>
    %cst_20 = arith.constant 1.000000e+00 : f32
    %25 = vector.broadcast %cst_20 : f32 to vector<8x32xf32>
    %26 = arith.addf %25, %24 : vector<8x32xf32>
    %27 = arith.divf %25, %26 : vector<8x32xf32>
    %28 = vector.extract_strided_slice %21 {offsets = [0, 32], sizes = [8, 32], strides = [1, 1]} : vector<8x128xf32> to vector<8x32xf32>
    %29 = arith.negf %28 : vector<8x32xf32>
    %30 = math.exp %29 : vector<8x32xf32>
    %cst_21 = arith.constant 1.000000e+00 : f32
    %31 = vector.broadcast %cst_21 : f32 to vector<8x32xf32>
    %32 = arith.addf %31, %30 : vector<8x32xf32>
    %33 = arith.divf %31, %32 : vector<8x32xf32>
    %34 = vector.extract_strided_slice %21 {offsets = [0, 64], sizes = [8, 32], strides = [1, 1]} : vector<8x128xf32> to vector<8x32xf32>
    %35 = math.tanh %34 : vector<8x32xf32>
    %36 = vector.extract_strided_slice %21 {offsets = [0, 96], sizes = [8, 32], strides = [1, 1]} : vector<8x128xf32> to vector<8x32xf32>
    %37 = arith.negf %36 : vector<8x32xf32>
    %38 = math.exp %37 : vector<8x32xf32>
    %cst_22 = arith.constant 1.000000e+00 : f32
    %39 = vector.broadcast %cst_22 : f32 to vector<8x32xf32>
    %40 = arith.addf %39, %38 : vector<8x32xf32>
    %41 = arith.divf %39, %40 : vector<8x32xf32>
    %42 = arith.mulf %27, %35 : vector<8x32xf32>
    %43 = arith.mulf %33, %13 : vector<8x32xf32>
    %44 = arith.addf %42, %43 : vector<8x32xf32>
    %45 = math.tanh %44 : vector<8x32xf32>
    %46 = arith.mulf %41, %45 : vector<8x32xf32>
    %47 = arith.addi %11, %c0_i32_14 : i32
    %48 = vector.broadcast %47 : i32 to vector<8x1xi32>
    %49 = arith.cmpi sgt, %10, %48 : vector<8x1xi32>
    %50 = vector.shape_cast %49 : vector<8x1xi1> to vector<8x1xi1>
    %51 = vector.broadcast %50 : vector<8x1xi1> to vector<8x32xi1>
    %52 = arith.select %51, %44, %13 : vector<8x32xi1>, vector<8x32xf32>
    %53 = vector.shape_cast %49 : vector<8x1xi1> to vector<8x1xi1>
    %54 = vector.broadcast %53 : vector<8x1xi1> to vector<8x32xi1>
    %55 = arith.select %54, %46, %12 : vector<8x32xi1>, vector<8x32xf32>
    %cst_23 = arith.constant 0.000000e+00 : f32
    %56 = vector.shape_cast %49 : vector<8x1xi1> to vector<8x1xi1>
    %57 = vector.broadcast %56 : vector<8x1xi1> to vector<8x32xi1>
    %58 = vector.broadcast %cst_23 : f32 to vector<8x32xf32>
    %59 = arith.select %57, %46, %58 : vector<8x32xi1>, vector<8x32xf32>
    %60 = arith.index_cast %c0_i32_14 : i32 to index
    %c0_24 = arith.constant 0 : index
    %c0_25 = arith.constant 0 : index
    %61 = vector.load %arg6[%60, %c0_24, %c0_25] : memref<8x8x32xf32, #tpu.memory_space<vmem>>, vector<1x8x32xf32>
    %62 = vector.shape_cast %61 : vector<1x8x32xf32> to vector<8x32xf32>
    %63 = vector.shape_cast %59 : vector<8x32xf32> to vector<1x8x32xf32>
    tpu.vector_store %arg6[%60, %c0_24, %c0_25], %63 {strides = array<i32>} : memref<8x8x32xf32, #tpu.memory_space<vmem>>, vector<1x8x32xf32>,
    %c1_i32 = arith.constant 1 : i32
    %64 = arith.truncf %55 : vector<8x32xf32> to vector<8x32xbf16>
    %c0_26 = arith.constant 0 : index
    %c0_27 = arith.constant 0 : index
    %65 = vector.load %arg4[%c0_26, %c0_27] : memref<32x128xbf16, #tpu.memory_space<vmem>>, vector<32x128xbf16>
    %cst_28 = arith.constant dense<0.000000e+00> : vector<8x128xf32>
    %66 = tpu.matmul %64, %65, %cst_28 {dimension_numbers = #tpu.dot_dimension_numbers<[1], [0], [0], [1], [0, 0, 1, 1], [], []>} : vector<8x32xbf16>, vector<32x128xbf16>, vector<8x128xf32> -> vector<8x128xf32>
    %c8_i32_29 = arith.constant 8 : i32
    %67 = arith.muli %c1_i32, %c8_i32_29 : i32
    %68 = tpu.assume_multiple %67, 8 : i32
    %69 = arith.index_cast %68 : i32 to index
    %c0_30 = arith.constant 0 : index
    %70 = vector.load %arg9[%69, %c0_30] : memref<64x128xf32, #tpu.memory_space<vmem>>, vector<8x128xf32>
    %71 = arith.addf %70, %66 : vector<8x128xf32>
    %72 = vector.extract_strided_slice %71 {offsets = [0, 0], sizes = [8, 32], strides = [1, 1]} : vector<8x128xf32> to vector<8x32xf32>
    %73 = arith.negf %72 : vector<8x32xf32>
    %74 = math.exp %73 : vector<8x32xf32>
    %cst_31 = arith.constant 1.000000e+00 : f32
    %75 = vector.broadcast %cst_31 : f32 to vector<8x32xf32>
    %76 = arith.addf %75, %74 : vector<8x32xf32>
    %77 = arith.divf %75, %76 : vector<8x32xf32>
    %78 = vector.extract_strided_slice %71 {offsets = [0, 32], sizes = [8, 32], strides = [1, 1]} : vector<8x128xf32> to vector<8x32xf32>
    %79 = arith.negf %78 : vector<8x32xf32>
    %80 = math.exp %79 : vector<8x32xf32>
    %cst_32 = arith.constant 1.000000e+00 : f32
    %81 = vector.broadcast %cst_32 : f32 to vector<8x32xf32>
    %82 = arith.addf %81, %80 : vector<8x32xf32>
    %83 = arith.divf %81, %82 : vector<8x32xf32>
    %84 = vector.extract_strided_slice %71 {offsets = [0, 64], sizes = [8, 32], strides = [1, 1]} : vector<8x128xf32> to vector<8x32xf32>
    %85 = math.tanh %84 : vector<8x32xf32>
    %86 = vector.extract_strided_slice %71 {offsets = [0, 96], sizes = [8, 32], strides = [1, 1]} : vector<8x128xf32> to vector<8x32xf32>
    %87 = arith.negf %86 : vector<8x32xf32>
    %88 = math.exp %87 : vector<8x32xf32>
    %cst_33 = arith.constant 1.000000e+00 : f32
    %89 = vector.broadcast %cst_33 : f32 to vector<8x32xf32>
    %90 = arith.addf %89, %88 : vector<8x32xf32>
    %91 = arith.divf %89, %90 : vector<8x32xf32>
    %92 = arith.mulf %77, %85 : vector<8x32xf32>
    %93 = arith.mulf %83, %52 : vector<8x32xf32>
    %94 = arith.addf %92, %93 : vector<8x32xf32>
    %95 = math.tanh %94 : vector<8x32xf32>
    %96 = arith.mulf %91, %95 : vector<8x32xf32>
    %97 = arith.addi %11, %c1_i32 : i32
    %98 = vector.broadcast %97 : i32 to vector<8x1xi32>
    %99 = arith.cmpi sgt, %10, %98 : vector<8x1xi32>
    %100 = vector.shape_cast %99 : vector<8x1xi1> to vector<8x1xi1>
    %101 = vector.broadcast %100 : vector<8x1xi1> to vector<8x32xi1>
    %102 = arith.select %101, %94, %52 : vector<8x32xi1>, vector<8x32xf32>
    %103 = vector.shape_cast %99 : vector<8x1xi1> to vector<8x1xi1>
    %104 = vector.broadcast %103 : vector<8x1xi1> to vector<8x32xi1>
    %105 = arith.select %104, %96, %55 : vector<8x32xi1>, vector<8x32xf32>
    %cst_34 = arith.constant 0.000000e+00 : f32
    %106 = vector.shape_cast %99 : vector<8x1xi1> to vector<8x1xi1>
    %107 = vector.broadcast %106 : vector<8x1xi1> to vector<8x32xi1>
    %108 = vector.broadcast %cst_34 : f32 to vector<8x32xf32>
    %109 = arith.select %107, %96, %108 : vector<8x32xi1>, vector<8x32xf32>
    %110 = arith.index_cast %c1_i32 : i32 to index
    %c0_35 = arith.constant 0 : index
    %c0_36 = arith.constant 0 : index
    %111 = vector.load %arg6[%110, %c0_35, %c0_36] : memref<8x8x32xf32, #tpu.memory_space<vmem>>, vector<1x8x32xf32>
    %112 = vector.shape_cast %111 : vector<1x8x32xf32> to vector<8x32xf32>
    %113 = vector.shape_cast %109 : vector<8x32xf32> to vector<1x8x32xf32>
    tpu.vector_store %arg6[%110, %c0_35, %c0_36], %113 {strides = array<i32>} : memref<8x8x32xf32, #tpu.memory_space<vmem>>, vector<1x8x32xf32>,
    %c2_i32 = arith.constant 2 : i32
    %114 = arith.truncf %105 : vector<8x32xf32> to vector<8x32xbf16>
    %c0_37 = arith.constant 0 : index
    %c0_38 = arith.constant 0 : index
    %115 = vector.load %arg4[%c0_37, %c0_38] : memref<32x128xbf16, #tpu.memory_space<vmem>>, vector<32x128xbf16>
    %cst_39 = arith.constant dense<0.000000e+00> : vector<8x128xf32>
    %116 = tpu.matmul %114, %115, %cst_39 {dimension_numbers = #tpu.dot_dimension_numbers<[1], [0], [0], [1], [0, 0, 1, 1], [], []>} : vector<8x32xbf16>, vector<32x128xbf16>, vector<8x128xf32> -> vector<8x128xf32>
    %c8_i32_40 = arith.constant 8 : i32
    %117 = arith.muli %c2_i32, %c8_i32_40 : i32
    %118 = tpu.assume_multiple %117, 8 : i32
    %119 = arith.index_cast %118 : i32 to index
    %c0_41 = arith.constant 0 : index
    %120 = vector.load %arg9[%119, %c0_41] : memref<64x128xf32, #tpu.memory_space<vmem>>, vector<8x128xf32>
    %121 = arith.addf %120, %116 : vector<8x128xf32>
    %122 = vector.extract_strided_slice %121 {offsets = [0, 0], sizes = [8, 32], strides = [1, 1]} : vector<8x128xf32> to vector<8x32xf32>
    %123 = arith.negf %122 : vector<8x32xf32>
    %124 = math.exp %123 : vector<8x32xf32>
    %cst_42 = arith.constant 1.000000e+00 : f32
    %125 = vector.broadcast %cst_42 : f32 to vector<8x32xf32>
    %126 = arith.addf %125, %124 : vector<8x32xf32>
    %127 = arith.divf %125, %126 : vector<8x32xf32>
    %128 = vector.extract_strided_slice %121 {offsets = [0, 32], sizes = [8, 32], strides = [1, 1]} : vector<8x128xf32> to vector<8x32xf32>
    %129 = arith.negf %128 : vector<8x32xf32>
    %130 = math.exp %129 : vector<8x32xf32>
    %cst_43 = arith.constant 1.000000e+00 : f32
    %131 = vector.broadcast %cst_43 : f32 to vector<8x32xf32>
    %132 = arith.addf %131, %130 : vector<8x32xf32>
    %133 = arith.divf %131, %132 : vector<8x32xf32>
    %134 = vector.extract_strided_slice %121 {offsets = [0, 64], sizes = [8, 32], strides = [1, 1]} : vector<8x128xf32> to vector<8x32xf32>
    %135 = math.tanh %134 : vector<8x32xf32>
    %136 = vector.extract_strided_slice %121 {offsets = [0, 96], sizes = [8, 32], strides = [1, 1]} : vector<8x128xf32> to vector<8x32xf32>
    %137 = arith.negf %136 : vector<8x32xf32>
    %138 = math.exp %137 : vector<8x32xf32>
    %cst_44 = arith.constant 1.000000e+00 : f32
    %139 = vector.broadcast %cst_44 : f32 to vector<8x32xf32>
    %140 = arith.addf %139, %138 : vector<8x32xf32>
    %141 = arith.divf %139, %140 : vector<8x32xf32>
    %142 = arith.mulf %127, %135 : vector<8x32xf32>
    %143 = arith.mulf %133, %102 : vector<8x32xf32>
    %144 = arith.addf %142, %143 : vector<8x32xf32>
    %145 = math.tanh %144 : vector<8x32xf32>
    %146 = arith.mulf %141, %145 : vector<8x32xf32>
    %147 = arith.addi %11, %c2_i32 : i32
    %148 = vector.broadcast %147 : i32 to vector<8x1xi32>
    %149 = arith.cmpi sgt, %10, %148 : vector<8x1xi32>
    %150 = vector.shape_cast %149 : vector<8x1xi1> to vector<8x1xi1>
    %151 = vector.broadcast %150 : vector<8x1xi1> to vector<8x32xi1>
    %152 = arith.select %151, %144, %102 : vector<8x32xi1>, vector<8x32xf32>
    %153 = vector.shape_cast %149 : vector<8x1xi1> to vector<8x1xi1>
    %154 = vector.broadcast %153 : vector<8x1xi1> to vector<8x32xi1>
    %155 = arith.select %154, %146, %105 : vector<8x32xi1>, vector<8x32xf32>
    %cst_45 = arith.constant 0.000000e+00 : f32
    %156 = vector.shape_cast %149 : vector<8x1xi1> to vector<8x1xi1>
    %157 = vector.broadcast %156 : vector<8x1xi1> to vector<8x32xi1>
    %158 = vector.broadcast %cst_45 : f32 to vector<8x32xf32>
    %159 = arith.select %157, %146, %158 : vector<8x32xi1>, vector<8x32xf32>
    %160 = arith.index_cast %c2_i32 : i32 to index
    %c0_46 = arith.constant 0 : index
    %c0_47 = arith.constant 0 : index
    %161 = vector.load %arg6[%160, %c0_46, %c0_47] : memref<8x8x32xf32, #tpu.memory_space<vmem>>, vector<1x8x32xf32>
    %162 = vector.shape_cast %161 : vector<1x8x32xf32> to vector<8x32xf32>
    %163 = vector.shape_cast %159 : vector<8x32xf32> to vector<1x8x32xf32>
    tpu.vector_store %arg6[%160, %c0_46, %c0_47], %163 {strides = array<i32>} : memref<8x8x32xf32, #tpu.memory_space<vmem>>, vector<1x8x32xf32>,
    %c3_i32 = arith.constant 3 : i32
    %164 = arith.truncf %155 : vector<8x32xf32> to vector<8x32xbf16>
    %c0_48 = arith.constant 0 : index
    %c0_49 = arith.constant 0 : index
    %165 = vector.load %arg4[%c0_48, %c0_49] : memref<32x128xbf16, #tpu.memory_space<vmem>>, vector<32x128xbf16>
    %cst_50 = arith.constant dense<0.000000e+00> : vector<8x128xf32>
    %166 = tpu.matmul %164, %165, %cst_50 {dimension_numbers = #tpu.dot_dimension_numbers<[1], [0], [0], [1], [0, 0, 1, 1], [], []>} : vector<8x32xbf16>, vector<32x128xbf16>, vector<8x128xf32> -> vector<8x128xf32>
    %c8_i32_51 = arith.constant 8 : i32
    %167 = arith.muli %c3_i32, %c8_i32_51 : i32
    %168 = tpu.assume_multiple %167, 8 : i32
    %169 = arith.index_cast %168 : i32 to index
    %c0_52 = arith.constant 0 : index
    %170 = vector.load %arg9[%169, %c0_52] : memref<64x128xf32, #tpu.memory_space<vmem>>, vector<8x128xf32>
    %171 = arith.addf %170, %166 : vector<8x128xf32>
    %172 = vector.extract_strided_slice %171 {offsets = [0, 0], sizes = [8, 32], strides = [1, 1]} : vector<8x128xf32> to vector<8x32xf32>
    %173 = arith.negf %172 : vector<8x32xf32>
    %174 = math.exp %173 : vector<8x32xf32>
    %cst_53 = arith.constant 1.000000e+00 : f32
    %175 = vector.broadcast %cst_53 : f32 to vector<8x32xf32>
    %176 = arith.addf %175, %174 : vector<8x32xf32>
    %177 = arith.divf %175, %176 : vector<8x32xf32>
    %178 = vector.extract_strided_slice %171 {offsets = [0, 32], sizes = [8, 32], strides = [1, 1]} : vector<8x128xf32> to vector<8x32xf32>
    %179 = arith.negf %178 : vector<8x32xf32>
    %180 = math.exp %179 : vector<8x32xf32>
    %cst_54 = arith.constant 1.000000e+00 : f32
    %181 = vector.broadcast %cst_54 : f32 to vector<8x32xf32>
    %182 = arith.addf %181, %180 : vector<8x32xf32>
    %183 = arith.divf %181, %182 : vector<8x32xf32>
    %184 = vector.extract_strided_slice %171 {offsets = [0, 64], sizes = [8, 32], strides = [1, 1]} : vector<8x128xf32> to vector<8x32xf32>
    %185 = math.tanh %184 : vector<8x32xf32>
    %186 = vector.extract_strided_slice %171 {offsets = [0, 96], sizes = [8, 32], strides = [1, 1]} : vector<8x128xf32> to vector<8x32xf32>
    %187 = arith.negf %186 : vector<8x32xf32>
    %188 = math.exp %187 : vector<8x32xf32>
    %cst_55 = arith.constant 1.000000e+00 : f32
    %189 = vector.broadcast %cst_55 : f32 to vector<8x32xf32>
    %190 = arith.addf %189, %188 : vector<8x32xf32>
    %191 = arith.divf %189, %190 : vector<8x32xf32>
    %192 = arith.mulf %177, %185 : vector<8x32xf32>
    %193 = arith.mulf %183, %152 : vector<8x32xf32>
    %194 = arith.addf %192, %193 : vector<8x32xf32>
    %195 = math.tanh %194 : vector<8x32xf32>
    %196 = arith.mulf %191, %195 : vector<8x32xf32>
    %197 = arith.addi %11, %c3_i32 : i32
    %198 = vector.broadcast %197 : i32 to vector<8x1xi32>
    %199 = arith.cmpi sgt, %10, %198 : vector<8x1xi32>
    %200 = vector.shape_cast %199 : vector<8x1xi1> to vector<8x1xi1>
    %201 = vector.broadcast %200 : vector<8x1xi1> to vector<8x32xi1>
    %202 = arith.select %201, %194, %152 : vector<8x32xi1>, vector<8x32xf32>
    %203 = vector.shape_cast %199 : vector<8x1xi1> to vector<8x1xi1>
    %204 = vector.broadcast %203 : vector<8x1xi1> to vector<8x32xi1>
    %205 = arith.select %204, %196, %155 : vector<8x32xi1>, vector<8x32xf32>
    %cst_56 = arith.constant 0.000000e+00 : f32
    %206 = vector.shape_cast %199 : vector<8x1xi1> to vector<8x1xi1>
    %207 = vector.broadcast %206 : vector<8x1xi1> to vector<8x32xi1>
    %208 = vector.broadcast %cst_56 : f32 to vector<8x32xf32>
    %209 = arith.select %207, %196, %208 : vector<8x32xi1>, vector<8x32xf32>
    %210 = arith.index_cast %c3_i32 : i32 to index
    %c0_57 = arith.constant 0 : index
    %c0_58 = arith.constant 0 : index
    %211 = vector.load %arg6[%210, %c0_57, %c0_58] : memref<8x8x32xf32, #tpu.memory_space<vmem>>, vector<1x8x32xf32>
    %212 = vector.shape_cast %211 : vector<1x8x32xf32> to vector<8x32xf32>
    %213 = vector.shape_cast %209 : vector<8x32xf32> to vector<1x8x32xf32>
    tpu.vector_store %arg6[%210, %c0_57, %c0_58], %213 {strides = array<i32>} : memref<8x8x32xf32, #tpu.memory_space<vmem>>, vector<1x8x32xf32>,
    %c4_i32 = arith.constant 4 : i32
    %214 = arith.truncf %205 : vector<8x32xf32> to vector<8x32xbf16>
    %c0_59 = arith.constant 0 : index
    %c0_60 = arith.constant 0 : index
    %215 = vector.load %arg4[%c0_59, %c0_60] : memref<32x128xbf16, #tpu.memory_space<vmem>>, vector<32x128xbf16>
    %cst_61 = arith.constant dense<0.000000e+00> : vector<8x128xf32>
    %216 = tpu.matmul %214, %215, %cst_61 {dimension_numbers = #tpu.dot_dimension_numbers<[1], [0], [0], [1], [0, 0, 1, 1], [], []>} : vector<8x32xbf16>, vector<32x128xbf16>, vector<8x128xf32> -> vector<8x128xf32>
    %c8_i32_62 = arith.constant 8 : i32
    %217 = arith.muli %c4_i32, %c8_i32_62 : i32
    %218 = tpu.assume_multiple %217, 8 : i32
    %219 = arith.index_cast %218 : i32 to index
    %c0_63 = arith.constant 0 : index
    %220 = vector.load %arg9[%219, %c0_63] : memref<64x128xf32, #tpu.memory_space<vmem>>, vector<8x128xf32>
    %221 = arith.addf %220, %216 : vector<8x128xf32>
    %222 = vector.extract_strided_slice %221 {offsets = [0, 0], sizes = [8, 32], strides = [1, 1]} : vector<8x128xf32> to vector<8x32xf32>
    %223 = arith.negf %222 : vector<8x32xf32>
    %224 = math.exp %223 : vector<8x32xf32>
    %cst_64 = arith.constant 1.000000e+00 : f32
    %225 = vector.broadcast %cst_64 : f32 to vector<8x32xf32>
    %226 = arith.addf %225, %224 : vector<8x32xf32>
    %227 = arith.divf %225, %226 : vector<8x32xf32>
    %228 = vector.extract_strided_slice %221 {offsets = [0, 32], sizes = [8, 32], strides = [1, 1]} : vector<8x128xf32> to vector<8x32xf32>
    %229 = arith.negf %228 : vector<8x32xf32>
    %230 = math.exp %229 : vector<8x32xf32>
    %cst_65 = arith.constant 1.000000e+00 : f32
    %231 = vector.broadcast %cst_65 : f32 to vector<8x32xf32>
    %232 = arith.addf %231, %230 : vector<8x32xf32>
    %233 = arith.divf %231, %232 : vector<8x32xf32>
    %234 = vector.extract_strided_slice %221 {offsets = [0, 64], sizes = [8, 32], strides = [1, 1]} : vector<8x128xf32> to vector<8x32xf32>
    %235 = math.tanh %234 : vector<8x32xf32>
    %236 = vector.extract_strided_slice %221 {offsets = [0, 96], sizes = [8, 32], strides = [1, 1]} : vector<8x128xf32> to vector<8x32xf32>
    %237 = arith.negf %236 : vector<8x32xf32>
    %238 = math.exp %237 : vector<8x32xf32>
    %cst_66 = arith.constant 1.000000e+00 : f32
    %239 = vector.broadcast %cst_66 : f32 to vector<8x32xf32>
    %240 = arith.addf %239, %238 : vector<8x32xf32>
    %241 = arith.divf %239, %240 : vector<8x32xf32>
    %242 = arith.mulf %227, %235 : vector<8x32xf32>
    %243 = arith.mulf %233, %202 : vector<8x32xf32>
    %244 = arith.addf %242, %243 : vector<8x32xf32>
    %245 = math.tanh %244 : vector<8x32xf32>
    %246 = arith.mulf %241, %245 : vector<8x32xf32>
    %247 = arith.addi %11, %c4_i32 : i32
    %248 = vector.broadcast %247 : i32 to vector<8x1xi32>
    %249 = arith.cmpi sgt, %10, %248 : vector<8x1xi32>
    %250 = vector.shape_cast %249 : vector<8x1xi1> to vector<8x1xi1>
    %251 = vector.broadcast %250 : vector<8x1xi1> to vector<8x32xi1>
    %252 = arith.select %251, %244, %202 : vector<8x32xi1>, vector<8x32xf32>
    %253 = vector.shape_cast %249 : vector<8x1xi1> to vector<8x1xi1>
    %254 = vector.broadcast %253 : vector<8x1xi1> to vector<8x32xi1>
    %255 = arith.select %254, %246, %205 : vector<8x32xi1>, vector<8x32xf32>
    %cst_67 = arith.constant 0.000000e+00 : f32
    %256 = vector.shape_cast %249 : vector<8x1xi1> to vector<8x1xi1>
    %257 = vector.broadcast %256 : vector<8x1xi1> to vector<8x32xi1>
    %258 = vector.broadcast %cst_67 : f32 to vector<8x32xf32>
    %259 = arith.select %257, %246, %258 : vector<8x32xi1>, vector<8x32xf32>
    %260 = arith.index_cast %c4_i32 : i32 to index
    %c0_68 = arith.constant 0 : index
    %c0_69 = arith.constant 0 : index
    %261 = vector.load %arg6[%260, %c0_68, %c0_69] : memref<8x8x32xf32, #tpu.memory_space<vmem>>, vector<1x8x32xf32>
    %262 = vector.shape_cast %261 : vector<1x8x32xf32> to vector<8x32xf32>
    %263 = vector.shape_cast %259 : vector<8x32xf32> to vector<1x8x32xf32>
    tpu.vector_store %arg6[%260, %c0_68, %c0_69], %263 {strides = array<i32>} : memref<8x8x32xf32, #tpu.memory_space<vmem>>, vector<1x8x32xf32>,
    %c5_i32 = arith.constant 5 : i32
    %264 = arith.truncf %255 : vector<8x32xf32> to vector<8x32xbf16>
    %c0_70 = arith.constant 0 : index
    %c0_71 = arith.constant 0 : index
    %265 = vector.load %arg4[%c0_70, %c0_71] : memref<32x128xbf16, #tpu.memory_space<vmem>>, vector<32x128xbf16>
    %cst_72 = arith.constant dense<0.000000e+00> : vector<8x128xf32>
    %266 = tpu.matmul %264, %265, %cst_72 {dimension_numbers = #tpu.dot_dimension_numbers<[1], [0], [0], [1], [0, 0, 1, 1], [], []>} : vector<8x32xbf16>, vector<32x128xbf16>, vector<8x128xf32> -> vector<8x128xf32>
    %c8_i32_73 = arith.constant 8 : i32
    %267 = arith.muli %c5_i32, %c8_i32_73 : i32
    %268 = tpu.assume_multiple %267, 8 : i32
    %269 = arith.index_cast %268 : i32 to index
    %c0_74 = arith.constant 0 : index
    %270 = vector.load %arg9[%269, %c0_74] : memref<64x128xf32, #tpu.memory_space<vmem>>, vector<8x128xf32>
    %271 = arith.addf %270, %266 : vector<8x128xf32>
    %272 = vector.extract_strided_slice %271 {offsets = [0, 0], sizes = [8, 32], strides = [1, 1]} : vector<8x128xf32> to vector<8x32xf32>
    %273 = arith.negf %272 : vector<8x32xf32>
    %274 = math.exp %273 : vector<8x32xf32>
    %cst_75 = arith.constant 1.000000e+00 : f32
    %275 = vector.broadcast %cst_75 : f32 to vector<8x32xf32>
    %276 = arith.addf %275, %274 : vector<8x32xf32>
    %277 = arith.divf %275, %276 : vector<8x32xf32>
    %278 = vector.extract_strided_slice %271 {offsets = [0, 32], sizes = [8, 32], strides = [1, 1]} : vector<8x128xf32> to vector<8x32xf32>
    %279 = arith.negf %278 : vector<8x32xf32>
    %280 = math.exp %279 : vector<8x32xf32>
    %cst_76 = arith.constant 1.000000e+00 : f32
    %281 = vector.broadcast %cst_76 : f32 to vector<8x32xf32>
    %282 = arith.addf %281, %280 : vector<8x32xf32>
    %283 = arith.divf %281, %282 : vector<8x32xf32>
    %284 = vector.extract_strided_slice %271 {offsets = [0, 64], sizes = [8, 32], strides = [1, 1]} : vector<8x128xf32> to vector<8x32xf32>
    %285 = math.tanh %284 : vector<8x32xf32>
    %286 = vector.extract_strided_slice %271 {offsets = [0, 96], sizes = [8, 32], strides = [1, 1]} : vector<8x128xf32> to vector<8x32xf32>
    %287 = arith.negf %286 : vector<8x32xf32>
    %288 = math.exp %287 : vector<8x32xf32>
    %cst_77 = arith.constant 1.000000e+00 : f32
    %289 = vector.broadcast %cst_77 : f32 to vector<8x32xf32>
    %290 = arith.addf %289, %288 : vector<8x32xf32>
    %291 = arith.divf %289, %290 : vector<8x32xf32>
    %292 = arith.mulf %277, %285 : vector<8x32xf32>
    %293 = arith.mulf %283, %252 : vector<8x32xf32>
    %294 = arith.addf %292, %293 : vector<8x32xf32>
    %295 = math.tanh %294 : vector<8x32xf32>
    %296 = arith.mulf %291, %295 : vector<8x32xf32>
    %297 = arith.addi %11, %c5_i32 : i32
    %298 = vector.broadcast %297 : i32 to vector<8x1xi32>
    %299 = arith.cmpi sgt, %10, %298 : vector<8x1xi32>
    %300 = vector.shape_cast %299 : vector<8x1xi1> to vector<8x1xi1>
    %301 = vector.broadcast %300 : vector<8x1xi1> to vector<8x32xi1>
    %302 = arith.select %301, %294, %252 : vector<8x32xi1>, vector<8x32xf32>
    %303 = vector.shape_cast %299 : vector<8x1xi1> to vector<8x1xi1>
    %304 = vector.broadcast %303 : vector<8x1xi1> to vector<8x32xi1>
    %305 = arith.select %304, %296, %255 : vector<8x32xi1>, vector<8x32xf32>
    %cst_78 = arith.constant 0.000000e+00 : f32
    %306 = vector.shape_cast %299 : vector<8x1xi1> to vector<8x1xi1>
    %307 = vector.broadcast %306 : vector<8x1xi1> to vector<8x32xi1>
    %308 = vector.broadcast %cst_78 : f32 to vector<8x32xf32>
    %309 = arith.select %307, %296, %308 : vector<8x32xi1>, vector<8x32xf32>
    %310 = arith.index_cast %c5_i32 : i32 to index
    %c0_79 = arith.constant 0 : index
    %c0_80 = arith.constant 0 : index
    %311 = vector.load %arg6[%310, %c0_79, %c0_80] : memref<8x8x32xf32, #tpu.memory_space<vmem>>, vector<1x8x32xf32>
    %312 = vector.shape_cast %311 : vector<1x8x32xf32> to vector<8x32xf32>
    %313 = vector.shape_cast %309 : vector<8x32xf32> to vector<1x8x32xf32>
    tpu.vector_store %arg6[%310, %c0_79, %c0_80], %313 {strides = array<i32>} : memref<8x8x32xf32, #tpu.memory_space<vmem>>, vector<1x8x32xf32>,
    %c6_i32 = arith.constant 6 : i32
    %314 = arith.truncf %305 : vector<8x32xf32> to vector<8x32xbf16>
    %c0_81 = arith.constant 0 : index
    %c0_82 = arith.constant 0 : index
    %315 = vector.load %arg4[%c0_81, %c0_82] : memref<32x128xbf16, #tpu.memory_space<vmem>>, vector<32x128xbf16>
    %cst_83 = arith.constant dense<0.000000e+00> : vector<8x128xf32>
    %316 = tpu.matmul %314, %315, %cst_83 {dimension_numbers = #tpu.dot_dimension_numbers<[1], [0], [0], [1], [0, 0, 1, 1], [], []>} : vector<8x32xbf16>, vector<32x128xbf16>, vector<8x128xf32> -> vector<8x128xf32>
    %c8_i32_84 = arith.constant 8 : i32
    %317 = arith.muli %c6_i32, %c8_i32_84 : i32
    %318 = tpu.assume_multiple %317, 8 : i32
    %319 = arith.index_cast %318 : i32 to index
    %c0_85 = arith.constant 0 : index
    %320 = vector.load %arg9[%319, %c0_85] : memref<64x128xf32, #tpu.memory_space<vmem>>, vector<8x128xf32>
    %321 = arith.addf %320, %316 : vector<8x128xf32>
    %322 = vector.extract_strided_slice %321 {offsets = [0, 0], sizes = [8, 32], strides = [1, 1]} : vector<8x128xf32> to vector<8x32xf32>
    %323 = arith.negf %322 : vector<8x32xf32>
    %324 = math.exp %323 : vector<8x32xf32>
    %cst_86 = arith.constant 1.000000e+00 : f32
    %325 = vector.broadcast %cst_86 : f32 to vector<8x32xf32>
    %326 = arith.addf %325, %324 : vector<8x32xf32>
    %327 = arith.divf %325, %326 : vector<8x32xf32>
    %328 = vector.extract_strided_slice %321 {offsets = [0, 32], sizes = [8, 32], strides = [1, 1]} : vector<8x128xf32> to vector<8x32xf32>
    %329 = arith.negf %328 : vector<8x32xf32>
    %330 = math.exp %329 : vector<8x32xf32>
    %cst_87 = arith.constant 1.000000e+00 : f32
    %331 = vector.broadcast %cst_87 : f32 to vector<8x32xf32>
    %332 = arith.addf %331, %330 : vector<8x32xf32>
    %333 = arith.divf %331, %332 : vector<8x32xf32>
    %334 = vector.extract_strided_slice %321 {offsets = [0, 64], sizes = [8, 32], strides = [1, 1]} : vector<8x128xf32> to vector<8x32xf32>
    %335 = math.tanh %334 : vector<8x32xf32>
    %336 = vector.extract_strided_slice %321 {offsets = [0, 96], sizes = [8, 32], strides = [1, 1]} : vector<8x128xf32> to vector<8x32xf32>
    %337 = arith.negf %336 : vector<8x32xf32>
    %338 = math.exp %337 : vector<8x32xf32>
    %cst_88 = arith.constant 1.000000e+00 : f32
    %339 = vector.broadcast %cst_88 : f32 to vector<8x32xf32>
    %340 = arith.addf %339, %338 : vector<8x32xf32>
    %341 = arith.divf %339, %340 : vector<8x32xf32>
    %342 = arith.mulf %327, %335 : vector<8x32xf32>
    %343 = arith.mulf %333, %302 : vector<8x32xf32>
    %344 = arith.addf %342, %343 : vector<8x32xf32>
    %345 = math.tanh %344 : vector<8x32xf32>
    %346 = arith.mulf %341, %345 : vector<8x32xf32>
    %347 = arith.addi %11, %c6_i32 : i32
    %348 = vector.broadcast %347 : i32 to vector<8x1xi32>
    %349 = arith.cmpi sgt, %10, %348 : vector<8x1xi32>
    %350 = vector.shape_cast %349 : vector<8x1xi1> to vector<8x1xi1>
    %351 = vector.broadcast %350 : vector<8x1xi1> to vector<8x32xi1>
    %352 = arith.select %351, %344, %302 : vector<8x32xi1>, vector<8x32xf32>
    %353 = vector.shape_cast %349 : vector<8x1xi1> to vector<8x1xi1>
    %354 = vector.broadcast %353 : vector<8x1xi1> to vector<8x32xi1>
    %355 = arith.select %354, %346, %305 : vector<8x32xi1>, vector<8x32xf32>
    %cst_89 = arith.constant 0.000000e+00 : f32
    %356 = vector.shape_cast %349 : vector<8x1xi1> to vector<8x1xi1>
    %357 = vector.broadcast %356 : vector<8x1xi1> to vector<8x32xi1>
    %358 = vector.broadcast %cst_89 : f32 to vector<8x32xf32>
    %359 = arith.select %357, %346, %358 : vector<8x32xi1>, vector<8x32xf32>
    %360 = arith.index_cast %c6_i32 : i32 to index
    %c0_90 = arith.constant 0 : index
    %c0_91 = arith.constant 0 : index
    %361 = vector.load %arg6[%360, %c0_90, %c0_91] : memref<8x8x32xf32, #tpu.memory_space<vmem>>, vector<1x8x32xf32>
    %362 = vector.shape_cast %361 : vector<1x8x32xf32> to vector<8x32xf32>
    %363 = vector.shape_cast %359 : vector<8x32xf32> to vector<1x8x32xf32>
    tpu.vector_store %arg6[%360, %c0_90, %c0_91], %363 {strides = array<i32>} : memref<8x8x32xf32, #tpu.memory_space<vmem>>, vector<1x8x32xf32>,
    %c7_i32 = arith.constant 7 : i32
    %364 = arith.truncf %355 : vector<8x32xf32> to vector<8x32xbf16>
    %c0_92 = arith.constant 0 : index
    %c0_93 = arith.constant 0 : index
    %365 = vector.load %arg4[%c0_92, %c0_93] : memref<32x128xbf16, #tpu.memory_space<vmem>>, vector<32x128xbf16>
    %cst_94 = arith.constant dense<0.000000e+00> : vector<8x128xf32>
    %366 = tpu.matmul %364, %365, %cst_94 {dimension_numbers = #tpu.dot_dimension_numbers<[1], [0], [0], [1], [0, 0, 1, 1], [], []>} : vector<8x32xbf16>, vector<32x128xbf16>, vector<8x128xf32> -> vector<8x128xf32>
    %c8_i32_95 = arith.constant 8 : i32
    %367 = arith.muli %c7_i32, %c8_i32_95 : i32
    %368 = tpu.assume_multiple %367, 8 : i32
    %369 = arith.index_cast %368 : i32 to index
    %c0_96 = arith.constant 0 : index
    %370 = vector.load %arg9[%369, %c0_96] : memref<64x128xf32, #tpu.memory_space<vmem>>, vector<8x128xf32>
    %371 = arith.addf %370, %366 : vector<8x128xf32>
    %372 = vector.extract_strided_slice %371 {offsets = [0, 0], sizes = [8, 32], strides = [1, 1]} : vector<8x128xf32> to vector<8x32xf32>
    %373 = arith.negf %372 : vector<8x32xf32>
    %374 = math.exp %373 : vector<8x32xf32>
    %cst_97 = arith.constant 1.000000e+00 : f32
    %375 = vector.broadcast %cst_97 : f32 to vector<8x32xf32>
    %376 = arith.addf %375, %374 : vector<8x32xf32>
    %377 = arith.divf %375, %376 : vector<8x32xf32>
    %378 = vector.extract_strided_slice %371 {offsets = [0, 32], sizes = [8, 32], strides = [1, 1]} : vector<8x128xf32> to vector<8x32xf32>
    %379 = arith.negf %378 : vector<8x32xf32>
    %380 = math.exp %379 : vector<8x32xf32>
    %cst_98 = arith.constant 1.000000e+00 : f32
    %381 = vector.broadcast %cst_98 : f32 to vector<8x32xf32>
    %382 = arith.addf %381, %380 : vector<8x32xf32>
    %383 = arith.divf %381, %382 : vector<8x32xf32>
    %384 = vector.extract_strided_slice %371 {offsets = [0, 64], sizes = [8, 32], strides = [1, 1]} : vector<8x128xf32> to vector<8x32xf32>
    %385 = math.tanh %384 : vector<8x32xf32>
    %386 = vector.extract_strided_slice %371 {offsets = [0, 96], sizes = [8, 32], strides = [1, 1]} : vector<8x128xf32> to vector<8x32xf32>
    %387 = arith.negf %386 : vector<8x32xf32>
    %388 = math.exp %387 : vector<8x32xf32>
    %cst_99 = arith.constant 1.000000e+00 : f32
    %389 = vector.broadcast %cst_99 : f32 to vector<8x32xf32>
    %390 = arith.addf %389, %388 : vector<8x32xf32>
    %391 = arith.divf %389, %390 : vector<8x32xf32>
    %392 = arith.mulf %377, %385 : vector<8x32xf32>
    %393 = arith.mulf %383, %352 : vector<8x32xf32>
    %394 = arith.addf %392, %393 : vector<8x32xf32>
    %395 = math.tanh %394 : vector<8x32xf32>
    %396 = arith.mulf %391, %395 : vector<8x32xf32>
    %397 = arith.addi %11, %c7_i32 : i32
    %398 = vector.broadcast %397 : i32 to vector<8x1xi32>
    %399 = arith.cmpi sgt, %10, %398 : vector<8x1xi32>
    %400 = vector.shape_cast %399 : vector<8x1xi1> to vector<8x1xi1>
    %401 = vector.broadcast %400 : vector<8x1xi1> to vector<8x32xi1>
    %402 = arith.select %401, %394, %352 : vector<8x32xi1>, vector<8x32xf32>
    %403 = vector.shape_cast %399 : vector<8x1xi1> to vector<8x1xi1>
    %404 = vector.broadcast %403 : vector<8x1xi1> to vector<8x32xi1>
    %405 = arith.select %404, %396, %355 : vector<8x32xi1>, vector<8x32xf32>
    %cst_100 = arith.constant 0.000000e+00 : f32
    %406 = vector.shape_cast %399 : vector<8x1xi1> to vector<8x1xi1>
    %407 = vector.broadcast %406 : vector<8x1xi1> to vector<8x32xi1>
    %408 = vector.broadcast %cst_100 : f32 to vector<8x32xf32>
    %409 = arith.select %407, %396, %408 : vector<8x32xi1>, vector<8x32xf32>
    %410 = arith.index_cast %c7_i32 : i32 to index
    %c0_101 = arith.constant 0 : index
    %c0_102 = arith.constant 0 : index
    %411 = vector.load %arg6[%410, %c0_101, %c0_102] : memref<8x8x32xf32, #tpu.memory_space<vmem>>, vector<1x8x32xf32>
    %412 = vector.shape_cast %411 : vector<1x8x32xf32> to vector<8x32xf32>
    %413 = vector.shape_cast %409 : vector<8x32xf32> to vector<1x8x32xf32>
    tpu.vector_store %arg6[%410, %c0_101, %c0_102], %413 {strides = array<i32>} : memref<8x8x32xf32, #tpu.memory_space<vmem>>, vector<1x8x32xf32>,
    %c8_i32_103 = arith.constant 8 : i32
    %c0_104 = arith.constant 0 : index
    %c0_105 = arith.constant 0 : index
    %414 = vector.load %arg10[%c0_104, %c0_105] : memref<8x32xf32, #tpu.memory_space<vmem>>, vector<8x32xf32>
    tpu.vector_store %arg10[%c0_104, %c0_105], %405 {strides = array<i32>} : memref<8x32xf32, #tpu.memory_space<vmem>>, vector<8x32xf32>,
    %c0_106 = arith.constant 0 : index
    %c0_107 = arith.constant 0 : index
    %415 = vector.load %arg11[%c0_106, %c0_107] : memref<8x32xf32, #tpu.memory_space<vmem>>, vector<8x32xf32>
    tpu.vector_store %arg11[%c0_106, %c0_107], %402 {strides = array<i32>} : memref<8x32xf32, #tpu.memory_space<vmem>>, vector<8x32xf32>,
    %c0_i32_108 = arith.constant 0 : i32
    %416 = arith.cmpi eq, %arg0, %c0_i32_108 : i32
    %417 = arith.extui %416 : i1 to i32
    %c0_i32_109 = arith.constant 0 : i32
    %418 = arith.cmpi ne, %417, %c0_i32_109 : i32
    scf.if %418 {
      %c0_110 = arith.constant 0 : index
      %c0_111 = arith.constant 0 : index
      %419 = vector.load %arg7[%c0_110, %c0_111] : memref<8x32xf32, #tpu.memory_space<vmem>>, vector<8x32xf32>
      tpu.vector_store %arg7[%c0_110, %c0_111], %405 {strides = array<i32>} : memref<8x32xf32, #tpu.memory_space<vmem>>, vector<8x32xf32>,
      %c0_112 = arith.constant 0 : index
      %c0_113 = arith.constant 0 : index
      %420 = vector.load %arg8[%c0_112, %c0_113] : memref<8x32xf32, #tpu.memory_space<vmem>>, vector<8x32xf32>
      tpu.vector_store %arg8[%c0_112, %c0_113], %402 {strides = array<i32>} : memref<8x32xf32, #tpu.memory_space<vmem>>, vector<8x32xf32>,
    } else {
    }
    return
  }
  func.func @transform_0(%arg0: i32) -> (i32, i32) {
    %c0_i32 = arith.constant 0 : i32
    %c0_i32_0 = arith.constant 0 : i32
    return %arg0, %c0_i32 : i32, i32
  }
  func.func @transform_1(%arg0: i32) -> (i32, i32) {
    %c0_i32 = arith.constant 0 : i32
    %c0_i32_0 = arith.constant 0 : i32
    %c0_i32_1 = arith.constant 0 : i32
    return %c0_i32, %c0_i32_0 : i32, i32
  }
  func.func @transform_2(%arg0: i32) -> (i32, i32) {
    %c0_i32 = arith.constant 0 : i32
    %c0_i32_0 = arith.constant 0 : i32
    %c0_i32_1 = arith.constant 0 : i32
    return %c0_i32, %c0_i32_0 : i32, i32
  }
  func.func @transform_3(%arg0: i32) -> (i32, i32) {
    %c0_i32 = arith.constant 0 : i32
    %c0_i32_0 = arith.constant 0 : i32
    %c0_i32_1 = arith.constant 0 : i32
    return %c0_i32, %c0_i32_0 : i32, i32
  }
  func.func @transform_4(%arg0: i32) -> (i32, i32) {
    %c0_i32 = arith.constant 0 : i32
    %c0_i32_0 = arith.constant 0 : i32
    %c0_i32_1 = arith.constant 0 : i32
    return %c0_i32, %c0_i32_0 : i32, i32
  }
  func.func @transform_5(%arg0: i32) -> (i32, i32, i32) {
    %c0_i32 = arith.constant 0 : i32
    %c0_i32_0 = arith.constant 0 : i32
    %c0_i32_1 = arith.constant 0 : i32
    return %arg0, %c0_i32, %c0_i32_0 : i32, i32, i32
  }
  func.func @transform_6(%arg0: i32) -> (i32, i32) {
    %c0_i32 = arith.constant 0 : i32
    %c0_i32_0 = arith.constant 0 : i32
    %c0_i32_1 = arith.constant 0 : i32
    return %c0_i32, %c0_i32_0 : i32, i32
  }
  func.func @transform_7(%arg0: i32) -> (i32, i32) {
    %c0_i32 = arith.constant 0 : i32
    %c0_i32_0 = arith.constant 0 : i32
    %c0_i32_1 = arith.constant 0 : i32
    return %c0_i32, %c0_i32_0 : i32, i32
  }
}

</mosaic_0001>

<bundles_post_ra>
// kernel: tpu_custom_call.1
= control target key start
LH: loop header
LB: loop body
LE: loop exit
PB: predicated region body
PF: predicated region fallthrough
CT: control target
= control target key end

     0   :  { %13 = vsyncpa [#allocation6], 0  ;;  %v1432_v1 = vmov 0.0   ;;  %vm30_vm0 = vcmask 261120   ;;  %vm1433_vm1 = vmmov 0   ;;  %s1434_s12 = smov 32   ;;  %s1849_s0 = inlined_call_operand.vmem [shape: bf16[64,32], index: 0, kind: input, shape index: {}]   ;;  %s1850_s1 = inlined_call_operand.vmem [shape: s32[8,1], index: 1, kind: input, shape index: {}]   ;;  %s1851_s2 = inlined_call_operand.vmem [shape: bf16[32,128], index: 2, kind: input, shape index: {}]   ;;  %s1852_s3 = inlined_call_operand.vmem [shape: bf16[32,128], index: 3, kind: input, shape index: {}]   ;;  %s1853_s4 = inlined_call_operand.vmem [shape: f32[1,128], index: 4, kind: input, shape index: {}]   ;;  %s1854_s5 = inlined_call_operand.hbm [shape: f32[8,8,32], index: 5, kind: output, shape index: {0}]   ;;  %s1855_s6 = inlined_call_operand.hbm [shape: f32[8,32], index: 6, kind: output, shape index: {1}]   ;;  %s1856_s7 = inlined_call_operand.hbm [shape: f32[8,32], index: 7, kind: output, shape index: {2}]  }
   0x1   :  { %v1276_v0 = vld [vmem:[%s1851_s2] sm:$0xff]   ;;  %1199 = vmatprep.subr.bf16.mxu1 %v1432_v1  ;;  %v1278_v3 = vld [vmem:[%s1851_s2 + $0x8] sm:$0xff]   ;;  %31 = vst.msk [vmem:[#allocation3] sm:$0xff] %vm30_vm0, %v1432_v1  ;;  %32 = vst.msk [vmem:[#allocation4] sm:$0xff] %vm30_vm0, %v1432_v1  ;;  %1203 = vmatprep.mubr.msk.bf16.mxu1 %vm1433_vm1, %v1432_v1 }
   0x2   :  { %v1277_v2 = vld [vmem:[%s1852_s3] sm:$0xff]   ;;  %1187 = vmatprep.subr.bf16.mxu0 %v1276_v0  ;;  %v1279_v4 = vld [vmem:[%s1852_s3 + $0x8] sm:$0xff]  }
   0x3   :  { %1188 = vmatpush3.bf16.msra.mxu0 %v1276_v0  ;;  %1200 = vmatpush3.bf16.msra.mxu1 %v1277_v2  ;;  %v1280_v5 = vld [vmem:[%s1849_s0] sm:$0xff]   ;;  %v1281_v6 = vld [vmem:[%s1849_s0 + $0x8] sm:$0xff]  }
   0x4   :  { %1189 = vmatprep.subr.bf16.mxu0 %v1278_v3  ;;  %1201 = vmatprep.subr.bf16.mxu1 %v1432_v1 }
   0x5   :  { %1191 = vmatprep.mubr.msk.bf16.mxu0 %vm30_vm0, %v1280_v5 }
   0x7   :  { %1190 = vmatpush3.bf16.msra.mxu0 %v1278_v3  ;;  %1202 = vmatpush3.bf16.msra.mxu1 %v1279_v4 }
   0x8   :  { %1207 = vmatprep.subr.bf16.mxu1 %v1432_v1  ;;  %1215 = vmatprep.subr.bf16.mxu0 %v1432_v1  ;;  %v172_v7 = vld [vmem:[#allocation3] sm:$0xff]  ;;  %v173_v8 = vld [vmem:[#allocation4] sm:$0xff] }
   0x9   :  { %v174_v9 = vpack.c.bf16 %v172_v7, %v172_v7  ;;  %249 = vrot.lane.b32.xlu0 %v173_v8, %s1434_s12 }
   0xa   :  { %1192 = vmatmul.mubr.msk.bf16.vlgmr.msra.gmra.mrb[0].mxu0 %vm30_vm0, %v1281_v6 }
   0xb   :  { %1204 = vmatmul.mubr.msk.bf16.vlgmr.msra.gmra.mrb[0].mxu1 %vm30_vm0, %v174_v9 }
   0xc   :  { %1211 = vmatprep.mubr.msk.bf16.mxu1 %vm1433_vm1, %v1432_v1 }
   0xd   :  { %14 = vsyncpa [#allocation8], 0  ;;  %v1435_v10 = vmov 0   ;;  %v1522_v11 = vld [vmem:[%s1853_s4] ss:$0 sm:$0xff]  ;;  %s1436_s15 = smov 64  }
   0xe   :  { %1274 = vset.pattern.permute.xlu1 %v1435_v10  ;;  %1275 = vset.pattern.permute.xlu0 %v1435_v10  ;;  %v1533_v27 = vld [vmem:[%s1850_s1] sm:$0xff]  ;;  %s1437_s17 = smov 96   ;;  %v1283_v36 = vld [vmem:[%s1852_s3 + $0x8] sm:$0xff]   ;;  %v1285_v4 = vld [vmem:[%s1849_s0 + $0x10] sm:$0xff]   ;;  %s1440_s26 = smov [#allocation9]  }
   0xf   :  { %vm265_vm2 = vcmp.gt.s32.totalorder %v1533_v27, 0  ;;  %v1282_v35 = vld [vmem:[%s1852_s3] sm:$0xff]   ;;  %vm379_vm4 = vcmp.gt.s32.totalorder %v1533_v27, 1  ;;  %v1286_v5 = vld [vmem:[%s1849_s0 + $0x18] sm:$0xff]   ;;  %1195 = vmatprep.mubr.msk.bf16.mxu0 %vm30_vm0, %v1285_v4  ;;  %v1287_v6 = vld [vmem:[%s1852_s3 + $0x8] sm:$0xff]   ;;  %vm490_vm6 = vcmp.gt.s32.totalorder %v1533_v27, 2 }
  0x10   :  { %v266_v30 = vsel %vm265_vm2, 1, %v1435_v10  ;;  %1208 = vmatpush3.bf16.msra.mxu1 %v1282_v35  ;;  %v380_v55 = vsel %vm379_vm4, 1, %v1435_v10  ;;  %v1284_v3 = vld [vmem:[%s1852_s3] sm:$0xff]   ;;  %vm601_vm8 = vcmp.gt.s32.totalorder %v1533_v27, 3  ;;  %vm712_vm10 = vcmp.gt.s32.totalorder %v1533_v27, 4  ;;  %s1099_s27 = sshll.u32 %s1440_s26, 4  ;;  %s1100_s27 = int_to_ptr.vmem [resolvable:$true] %s1099_s27 }
  0x11   :  { %1209 = vmatprep.subr.bf16.mxu1 %v1432_v1  ;;  %1216 = vmatpush3.bf16.msra.mxu0 %v1284_v3  ;;  %vm823_vm12 = vcmp.gt.s32.totalorder %v1533_v27, 5  ;;  %vm934_vm14 = vcmp.gt.s32.totalorder %v1533_v27, 6 }
  0x12   :  { %1196 = vmatmul.mubr.msk.bf16.gmra.mrb[4].mxu0 %vm30_vm0, %v1286_v5  ;;  %1217 = vmatprep.subr.bf16.mxu0 %v1432_v1 }
  0x13   :  { %1219 = vmatprep.mubr.msk.bf16.mxu0 %vm1433_vm1, %v1432_v1 }
  0x14   :  { %1210 = vmatpush3.bf16.msra.mxu1 %v1283_v36 }
  0x15   :  { %1223 = vmatprep.subr.bf16.mxu1 %v1432_v1  ;;  %1218 = vmatpush3.bf16.msra.mxu0 %v1287_v6  ;;  %v1290_v6 = vld [vmem:[%s1852_s3] sm:$0xff]  }
  0x16   :  { %1231 = vmatprep.subr.bf16.mxu0 %v1432_v1 }
  0x7b   :  { %v250_v26 = vpop.permute.xlu0 %249 }
  0xdd   :  { %v1524_v12 = vpop.f32.mrb[0].mxu0 }
  0xde   :  { %v131_v13 = vpop.f32.mrb[1].mxu0  ;;  %v228_v14 = vpop.f32.mrb[0].mxu1 }
  0xdf   :  { %v132_v15 = vadd.f32 %v1522_v11, %v131_v13  ;;  %v1527_v16 = vpop.f32.mrb[2].mxu0  ;;  %v1205_v17 = vpop.f32.mrb[1].mxu1 }
  0xe0   :  { %v134_v18 = vpop.f32.mrb[3].mxu0  ;;  %v231_v20 = vpop.f32.mrb[2].mxu1 }
  0xe1   :  { %v235_v19 = vadd.f32 %v228_v14, %v132_v15  ;;  %v1206_v21 = vpop.f32.mrb[3].mxu1  ;;  %v135_v46 = vadd.f32 %v1522_v11, %v134_v18 }
  0xe2   :  { %v140_v21 = vadd.f32 %v1524_v12, %v1522_v11 }
  0xe3   :  { %v1128_v22 = vmul.f32 -1.442695, %v235_v19  ;;  %1298 = vtanh.f32 %v235_v19 }
  0xe5   :  { %1300 = vpow2.f32 %v1128_v22  ;;  %v1602_v15 = vpop.f32.mrb[4].mxu0 }
  0xe6   :  { %v1604_v17 = vpop.f32.mrb[5].mxu0 }
  0xe7   :  { %v1606_v18 = vpop.f32.mrb[6].mxu0 }
  0xe8   :  { %v1608_v19 = vpop.f32.mrb[7].mxu0 }
  0xed   :  { %v1299_v23 = vpop.eup %1298 }
  0xee   :  { %244 = vrot.lane.b32.xlu0 %v1299_v23, %s1436_s15 }
  0xef   :  { %v1301_v24 = vpop.eup %1300 }
  0xf0   :  { %v239_v25 = vadd.f32 1.0, %v1301_v24 }
  0xf2   :  { %1302 = vrcp.f32 %v239_v25 }
  0xfc   :  { %v1303_v28 = vpop.eup %1302 }
  0xfd   :  { %v252_v29 = vmul.f32 %v1303_v28, %v250_v26 }
  0xff   :  { %254 = vrot.lane.b32.xlu1 %v252_v29, %s1437_s17 }
 0x103   :  { %268 = vperm.xlu1 %1274, %v266_v30  }
 0x107   :  { %273 = vrot.lane.b32.xlu1 %v172_v7, %s1437_s17 }
 0x160   :  { %v245_v31 = vpop.permute.xlu0 %244 }
 0x161   :  { %v247_v32 = vmul.f32 %v1303_v28, %v245_v31  ;;  %v491_v31 = vsel %vm490_vm6, 1, %v1435_v10 }
 0x171   :  { %v255_v33 = vpop.permute.xlu1 %254 }
 0x172   :  { %v257_v34 = vadd.f32 %v255_v33, %v247_v32 }
 0x174   :  { %1304 = vtanh.f32 %v257_v34 }
 0x17e   :  { %v1305_v37 = vpop.eup %1304 }
 0x17f   :  { %260 = vrot.lane.b32.xlu0 %v1305_v37, %s1437_s17 }
 0x182   :  { %v1548_v38 = vpop.permute.xlu1 %268 }
 0x183   :  { %vm270_vm3 = vcmp.eq.s32.totalorder %v1548_v38, 1 }
 0x184   :  { %v271_v39 = vsel %vm270_vm3, %v257_v34, %v173_v8 }
 0x185   :  { %362 = vrot.lane.b32.xlu1 %v271_v39, %s1434_s12 }
 0x186   :  { %v274_v41 = vpop.permute.xlu1 %273 }
 0x1f1   :  { %v261_v40 = vpop.permute.xlu0 %260 }
 0x1f2   :  { %v1554_v42 = vmul.f32 %v1303_v28, %v261_v40  ;;  %v1288_v40 = vld [vmem:[%s1852_s3] sm:$0xff]  }
 0x1f4   :  { %v276_v43 = vsel %vm270_vm3, %v1554_v42, %v274_v41  ;;  %v1289_v41 = vld [vmem:[%s1852_s3 + $0x8] sm:$0xff]  }
 0x1f5   :  { %v283_v44 = vpack.c.bf16 %v276_v43, %v276_v43 }
 0x1f7   :  { %289 = vrot.lane.b32.xlu0 %v283_v44, %s1434_s12  ;;  %v363_v58 = vpop.permute.xlu1 %362 }
 0x269   :  { %v290_v45 = vpop.permute.xlu0 %289 }
 0x26a   :  { %1212 = vmatmul.mubr.msk.bf16.vlgmr.msra.gmra.mrb[4].mxu1 %vm30_vm0, %v290_v45 }
 0x26b   :  { %1227 = vmatprep.mubr.msk.bf16.mxu1 %vm1433_vm1, %v1432_v1  ;;  %1224 = vmatpush3.bf16.msra.mxu1 %v1288_v40 }
 0x26c   :  { %1225 = vmatprep.subr.bf16.mxu1 %v1432_v1 }
 0x26f   :  { %1226 = vmatpush3.bf16.msra.mxu1 %v1289_v41 }
 0x270   :  { %1239 = vmatprep.subr.bf16.mxu1 %v1432_v1 }
 0x33d   :  { %v340_v47 = vpop.f32.mrb[4].mxu1 }
 0x33e   :  { %v348_v48 = vadd.f32 %v340_v47, %v135_v46  ;;  %v1213_v49 = vpop.f32.mrb[5].mxu1 }
 0x33f   :  { %v343_v50 = vpop.f32.mrb[6].mxu1 }
 0x340   :  { %v1132_v51 = vmul.f32 -1.442695, %v348_v48  ;;  %1306 = vtanh.f32 %v348_v48  ;;  %v1214_v52 = vpop.f32.mrb[7].mxu1 }
 0x342   :  { %1308 = vpow2.f32 %v1132_v51  ;;  %v143_v51 = vadd.f32 %v1527_v16, %v1522_v11 }
 0x34a   :  { %v1307_v53 = vpop.eup %1306 }
 0x34b   :  { %357 = vrot.lane.b32.xlu0 %v1307_v53, %s1436_s15 }
 0x34c   :  { %v1309_v54 = vpop.eup %1308 }
 0x34d   :  { %v352_v56 = vadd.f32 1.0, %v1309_v54 }
 0x34f   :  { %1310 = vrcp.f32 %v352_v56  ;;  %382 = vperm.xlu0 %1275, %v380_v55  }
 0x359   :  { %v1311_v57 = vpop.eup %1310 }
 0x35a   :  { %v365_v59 = vmul.f32 %v1311_v57, %v363_v58 }
 0x35c   :  { %367 = vrot.lane.b32.xlu1 %v365_v59, %s1437_s17 }
 0x3bd   :  { %v358_v60 = vpop.permute.xlu0 %357 }
 0x3be   :  { %v360_v61 = vmul.f32 %v1311_v57, %v358_v60  ;;  %v602_v60 = vsel %vm601_vm8, 1, %v1435_v10 }
 0x3ce   :  { %v368_v62 = vpop.permute.xlu1 %367  ;;  %v1568_v63 = vpop.permute.xlu0 %382 }
 0x3cf   :  { %v370_v0 = vadd.f32 %v368_v62, %v360_v61  ;;  %vm384_vm5 = vcmp.eq.s32.totalorder %v1568_v63, 1 }
 0x3d1   :  { %1312 = vtanh.f32 %v370_v0  ;;  %v1573_v2 = vsel %vm384_vm5, %v370_v0, %v271_v39 }
 0x3d2   :  { %473 = vrot.lane.b32.xlu0 %v1573_v2, %s1434_s12 }
 0x3db   :  { %v1313_v7 = vpop.eup %1312 }
 0x3dc   :  { %373 = vrot.lane.b32.xlu1 %v1313_v7, %s1437_s17  ;;  %v1291_v7 = vld [vmem:[%s1852_s3 + $0x8] sm:$0xff]  }
 0x444   :  { %v474_v33 = vpop.permute.xlu0 %473 }
 0x44e   :  { %v374_v8 = vpop.permute.xlu1 %373 }
 0x44f   :  { %v1596_v9 = vmul.f32 %v1311_v57, %v374_v8 }
 0x451   :  { %v386_v13 = vsel %vm384_vm5, %v1596_v9, %v276_v43 }
 0x452   :  { %v394_v14 = vpack.c.bf16 %v386_v13, %v386_v13 }
 0x454   :  { %400 = vrot.lane.b32.xlu1 %v394_v14, %s1434_s12 }
 0x4c6   :  { %v401_v20 = vpop.permute.xlu1 %400 }
 0x4c7   :  { %1220 = vmatmul.mubr.msk.bf16.vlgmr.msra.gmra.mrb[8].mxu0 %vm30_vm0, %v401_v20 }
 0x4c8   :  { %1235 = vmatprep.mubr.msk.bf16.mxu0 %vm1433_vm1, %v1432_v1  ;;  %1232 = vmatpush3.bf16.msra.mxu0 %v1290_v6 }
 0x4c9   :  { %1233 = vmatprep.subr.bf16.mxu0 %v1432_v1 }
 0x4cc   :  { %1234 = vmatpush3.bf16.msra.mxu0 %v1291_v7 }
 0x4cd   :  { %1247 = vmatprep.subr.bf16.mxu0 %v1432_v1 }
 0x59a   :  { %v451_v22 = vpop.f32.mrb[8].mxu0 }
 0x59b   :  { %v459_v23 = vadd.f32 %v451_v22, %v140_v21  ;;  %v1221_v24 = vpop.f32.mrb[9].mxu0 }
 0x59c   :  { %v454_v25 = vpop.f32.mrb[10].mxu0 }
 0x59d   :  { %v1136_v26 = vmul.f32 -1.442695, %v459_v23  ;;  %1314 = vtanh.f32 %v459_v23  ;;  %v1222_v28 = vpop.f32.mrb[11].mxu0  ;;  %v148_v25 = vadd.f32 %v1522_v11, %v1604_v17 }
 0x59f   :  { %1316 = vpow2.f32 %v1136_v26 }
 0x5a7   :  { %v1315_v29 = vpop.eup %1314 }
 0x5a8   :  { %468 = vrot.lane.b32.xlu1 %v1315_v29, %s1436_s15 }
 0x5a9   :  { %v1317_v30 = vpop.eup %1316 }
 0x5aa   :  { %v463_v32 = vadd.f32 1.0, %v1317_v30 }
 0x5ac   :  { %1318 = vrcp.f32 %v463_v32  ;;  %493 = vperm.xlu1 %1274, %v491_v31  }
 0x5b6   :  { %v1319_v12 = vpop.eup %1318 }
 0x5b7   :  { %v476_v34 = vmul.f32 %v1319_v12, %v474_v33 }
 0x5b9   :  { %478 = vrot.lane.b32.xlu0 %v476_v34, %s1437_s17  ;;  %v713_v34 = vsel %vm712_vm10, 1, %v1435_v10 }
 0x61a   :  { %v469_v35 = vpop.permute.xlu1 %468 }
 0x61b   :  { %v471_v36 = vmul.f32 %v1319_v12, %v469_v35 }
 0x62b   :  { %v479_v37 = vpop.permute.xlu0 %478  ;;  %v1626_v43 = vpop.permute.xlu1 %493 }
 0x62c   :  { %v481_v39 = vadd.f32 %v479_v37, %v471_v36  ;;  %vm495_vm7 = vcmp.eq.s32.totalorder %v1626_v43, 1 }
 0x62e   :  { %1320 = vtanh.f32 %v481_v39  ;;  %v496_v45 = vsel %vm495_vm7, %v481_v39, %v1573_v2 }
 0x638   :  { %v1321_v44 = vpop.eup %1320 }
 0x639   :  { %484 = vrot.lane.b32.xlu0 %v1321_v44, %s1437_s17 }
 0x63d   :  { %584 = vrot.lane.b32.xlu0 %v496_v45, %s1434_s12 }
 0x6ab   :  { %v485_v46 = vpop.permute.xlu0 %484 }
 0x6ac   :  { %v1635_v47 = vmul.f32 %v1319_v12, %v485_v46  ;;  %v1293_v46 = vld [vmem:[%s1852_s3 + $0x8] sm:$0xff]  }
 0x6ae   :  { %v497_v48 = vsel %vm495_vm7, %v1635_v47, %v386_v13 }
 0x6af   :  { %v505_v49 = vpack.c.bf16 %v497_v48, %v497_v48  ;;  %v585_v62 = vpop.permute.xlu0 %584 }
 0x6b1   :  { %511 = vrot.lane.b32.xlu1 %v505_v49, %s1434_s12 }
 0x723   :  { %v512_v50 = vpop.permute.xlu1 %511 }
 0x724   :  { %1228 = vmatmul.mubr.msk.bf16.vlgmr.msra.gmra.mrb[8].mxu1 %vm30_vm0, %v512_v50 }
 0x725   :  { %1243 = vmatprep.mubr.msk.bf16.mxu1 %vm1433_vm1, %v1432_v1 }
 0x7f7   :  { %v562_v52 = vpop.f32.mrb[8].mxu1 }
 0x7f8   :  { %v570_v53 = vadd.f32 %v562_v52, %v143_v51  ;;  %v1229_v54 = vpop.f32.mrb[9].mxu1 }
 0x7f9   :  { %v565_v55 = vpop.f32.mrb[10].mxu1 }
 0x7fa   :  { %v1140_v56 = vmul.f32 -1.442695, %v570_v53  ;;  %1322 = vtanh.f32 %v570_v53  ;;  %v1230_v57 = vpop.f32.mrb[11].mxu1 }
 0x7fc   :  { %1324 = vpow2.f32 %v1140_v56  ;;  %v151_v56 = vadd.f32 %v1522_v11, %v1608_v19 }
 0x804   :  { %v1323_v58 = vpop.eup %1322 }
 0x805   :  { %579 = vrot.lane.b32.xlu1 %v1323_v58, %s1436_s15 }
 0x806   :  { %v1325_v59 = vpop.eup %1324 }
 0x807   :  { %v574_v61 = vadd.f32 1.0, %v1325_v59 }
 0x809   :  { %1326 = vrcp.f32 %v574_v61  ;;  %604 = vperm.xlu1 %1274, %v602_v60  }
 0x813   :  { %v1327_v16 = vpop.eup %1326 }
 0x814   :  { %v587_v0 = vmul.f32 %v1327_v16, %v585_v62 }
 0x816   :  { %589 = vrot.lane.b32.xlu0 %v587_v0, %s1437_s17 }
 0x877   :  { %v580_v2 = vpop.permute.xlu1 %579 }
 0x878   :  { %v582_v3 = vmul.f32 %v1327_v16, %v580_v2  ;;  %v824_v2 = vsel %vm823_vm12, 1, %v1435_v10 }
 0x888   :  { %v590_v4 = vpop.permute.xlu0 %589  ;;  %v1657_v8 = vpop.permute.xlu1 %604 }
 0x889   :  { %v592_v5 = vadd.f32 %v590_v4, %v582_v3  ;;  %vm606_vm9 = vcmp.eq.s32.totalorder %v1657_v8, 1 }
 0x88b   :  { %1328 = vtanh.f32 %v592_v5  ;;  %v607_v14 = vsel %vm606_vm9, %v592_v5, %v496_v45  ;;  %v1292_v45 = vld [vmem:[%s1852_s3] sm:$0xff]  }
 0x88c   :  { %1240 = vmatpush3.bf16.msra.mxu1 %v1292_v45 }
 0x88d   :  { %1241 = vmatprep.subr.bf16.mxu1 %v1432_v1 }
 0x890   :  { %1242 = vmatpush3.bf16.msra.mxu1 %v1293_v46 }
 0x891   :  { %1255 = vmatprep.subr.bf16.mxu1 %v1432_v1 }
 0x895   :  { %v1329_v13 = vpop.eup %1328 }
 0x896   :  { %595 = vrot.lane.b32.xlu0 %v1329_v13, %s1437_s17 }
 0x89a   :  { %695 = vrot.lane.b32.xlu0 %v607_v14, %s1434_s12 }
 0x908   :  { %v596_v20 = vpop.permute.xlu0 %595 }
 0x909   :  { %v1665_v21 = vmul.f32 %v1327_v16, %v596_v20  ;;  %v1294_v20 = vld [vmem:[%s1852_s3] sm:$0xff]  }
 0x90b   :  { %v608_v22 = vsel %vm606_vm9, %v1665_v21, %v497_v48 }
 0x90c   :  { %v616_v23 = vpack.c.bf16 %v608_v22, %v608_v22  ;;  %v696_v36 = vpop.permute.xlu0 %695 }
 0x90e   :  { %622 = vrot.lane.b32.xlu1 %v616_v23, %s1434_s12 }
 0x980   :  { %v623_v24 = vpop.permute.xlu1 %622 }
 0x981   :  { %1236 = vmatmul.mubr.msk.bf16.vlgmr.msra.gmra.mrb[12].mxu0 %vm30_vm0, %v623_v24 }
 0x982   :  { %1251 = vmatprep.mubr.msk.bf16.mxu0 %vm1433_vm1, %v1432_v1  ;;  %1248 = vmatpush3.bf16.msra.mxu0 %v1294_v20 }
 0x983   :  { %1249 = vmatprep.subr.bf16.mxu0 %v1432_v1 }
 0xa54   :  { %v673_v26 = vpop.f32.mrb[12].mxu0 }
 0xa55   :  { %v681_v28 = vadd.f32 %v673_v26, %v148_v25  ;;  %v1237_v29 = vpop.f32.mrb[13].mxu0 }
 0xa56   :  { %v676_v30 = vpop.f32.mrb[14].mxu0 }
 0xa57   :  { %v1144_v31 = vmul.f32 -1.442695, %v681_v28  ;;  %1330 = vtanh.f32 %v681_v28  ;;  %v1238_v32 = vpop.f32.mrb[15].mxu0 }
 0xa58   :  { %v156_v32 = vadd.f32 %v1602_v15, %v1522_v11 }
 0xa59   :  { %1332 = vpow2.f32 %v1144_v31 }
 0xa61   :  { %v1331_v12 = vpop.eup %1330 }
 0xa62   :  { %690 = vrot.lane.b32.xlu1 %v1331_v12, %s1436_s15 }
 0xa63   :  { %v1333_v33 = vpop.eup %1332 }
 0xa64   :  { %v685_v35 = vadd.f32 1.0, %v1333_v33 }
 0xa66   :  { %1334 = vrcp.f32 %v685_v35  ;;  %715 = vperm.xlu1 %1274, %v713_v34  }
 0xa70   :  { %v1335_v17 = vpop.eup %1334 }
 0xa71   :  { %v698_v37 = vmul.f32 %v1335_v17, %v696_v36 }
 0xa73   :  { %700 = vrot.lane.b32.xlu0 %v698_v37, %s1437_s17 }
 0xad4   :  { %v691_v39 = vpop.permute.xlu1 %690 }
 0xad5   :  { %v693_v40 = vmul.f32 %v1335_v17, %v691_v39 }
 0xae5   :  { %v701_v41 = vpop.permute.xlu0 %700  ;;  %v1687_v48 = vpop.permute.xlu1 %715 }
 0xae6   :  { %v703_v44 = vadd.f32 %v701_v41, %v693_v40  ;;  %vm717_vm11 = vcmp.eq.s32.totalorder %v1687_v48, 1  ;;  %v935_v40 = vsel %vm934_vm14, 1, %v1435_v10 }
 0xae8   :  { %1336 = vtanh.f32 %v703_v44  ;;  %v718_v50 = vsel %vm717_vm11, %v703_v44, %v607_v14 }
 0xaf2   :  { %v1337_v49 = vpop.eup %1336 }
 0xaf3   :  { %706 = vrot.lane.b32.xlu0 %v1337_v49, %s1437_s17 }
 0xaf7   :  { %806 = vrot.lane.b32.xlu0 %v718_v50, %s1434_s12 }
 0xb65   :  { %v707_v51 = vpop.permute.xlu0 %706 }
 0xb66   :  { %v1695_v52 = vmul.f32 %v1335_v17, %v707_v51 }
 0xb68   :  { %v719_v53 = vsel %vm717_vm11, %v1695_v52, %v608_v22  ;;  %v1295_v22 = vld [vmem:[%s1852_s3 + $0x8] sm:$0xff]  }
 0xb69   :  { %v727_v54 = vpack.c.bf16 %v719_v53, %v719_v53  ;;  %v807_v4 = vpop.permute.xlu0 %806  ;;  %1250 = vmatpush3.bf16.msra.mxu0 %v1295_v22 }
 0xb6b   :  { %733 = vrot.lane.b32.xlu1 %v727_v54, %s1434_s12  ;;  %v1297_v54 = vld [vmem:[%s1852_s3 + $0x8] sm:$0xff]  }
 0xbdd   :  { %v734_v55 = vpop.permute.xlu1 %733 }
 0xbde   :  { %1244 = vmatmul.mubr.msk.bf16.vlgmr.msra.gmra.mrb[12].mxu1 %vm30_vm0, %v734_v55 }
 0xbdf   :  { %1259 = vmatprep.mubr.msk.bf16.mxu1 %vm1433_vm1, %v1432_v1  ;;  %vm1045_vm1 = vcmp.gt.s32.totalorder %v1533_v27, 7 }
 0xcb1   :  { %v784_v57 = vpop.f32.mrb[12].mxu1 }
 0xcb2   :  { %v792_v58 = vadd.f32 %v784_v57, %v151_v56  ;;  %v1245_v59 = vpop.f32.mrb[13].mxu1 }
 0xcb3   :  { %v787_v60 = vpop.f32.mrb[14].mxu1 }
 0xcb4   :  { %v1148_v61 = vmul.f32 -1.442695, %v792_v58  ;;  %1338 = vtanh.f32 %v792_v58  ;;  %v1246_v16 = vpop.f32.mrb[15].mxu1 }
 0xcb5   :  { %v159_v16 = vadd.f32 %v1606_v18, %v1522_v11  ;;  %v387_v11 = vsel %vm384_vm5, %v1596_v9, 0.0  ;;  %v609_v18 = vsel %vm606_vm9, %v1665_v21, 0.0 }
 0xcb6   :  { %1340 = vpow2.f32 %v1148_v61 }
 0xcbe   :  { %v1339_v62 = vpop.eup %1338 }
 0xcbf   :  { %801 = vrot.lane.b32.xlu1 %v1339_v62, %s1436_s15 }
 0xcc0   :  { %v1341_v0 = vpop.eup %1340 }
 0xcc1   :  { %v796_v3 = vadd.f32 1.0, %v1341_v0 }
 0xcc3   :  { %1342 = vrcp.f32 %v796_v3  ;;  %826 = vperm.xlu1 %1274, %v824_v2  }
 0xccd   :  { %v1343_v19 = vpop.eup %1342 }
 0xcce   :  { %v809_v5 = vmul.f32 %v1343_v19, %v807_v4 }
 0xcd0   :  { %811 = vrot.lane.b32.xlu0 %v809_v5, %s1437_s17 }
 0xd31   :  { %v802_v6 = vpop.permute.xlu1 %801 }
 0xd32   :  { %v804_v7 = vmul.f32 %v1343_v19, %v802_v6 }
 0xd42   :  { %v812_v13 = vpop.permute.xlu0 %811  ;;  %v1717_v23 = vpop.permute.xlu1 %826 }
 0xd43   :  { %v814_v14 = vadd.f32 %v812_v13, %v804_v7  ;;  %vm828_vm13 = vcmp.eq.s32.totalorder %v1717_v23, 1  ;;  %v1046_v7 = vsel %vm1045_vm1, 1, %v1435_v10 }
 0xd45   :  { %1344 = vtanh.f32 %v814_v14  ;;  %v829_v25 = vsel %vm828_vm13, %v814_v14, %v718_v50 }
 0xd4f   :  { %v1345_v24 = vpop.eup %1344 }
 0xd50   :  { %817 = vrot.lane.b32.xlu0 %v1345_v24, %s1437_s17 }
 0xd54   :  { %917 = vrot.lane.b32.xlu0 %v829_v25, %s1434_s12 }
 0xdc2   :  { %v818_v26 = vpop.permute.xlu0 %817 }
 0xdc3   :  { %v1724_v28 = vmul.f32 %v1343_v19, %v818_v26 }
 0xdc5   :  { %v830_v29 = vsel %vm828_vm13, %v1724_v28, %v719_v53  ;;  %v1296_v53 = vld [vmem:[%s1852_s3] sm:$0xff]   ;;  %v831_v10 = vsel %vm828_vm13, %v1724_v28, 0.0  ;;  %s1438_s3 = smov [#allocation7]  }
 0xdc6   :  { %v838_v30 = vpack.c.bf16 %v830_v29, %v830_v29  ;;  %v918_v44 = vpop.permute.xlu0 %917  ;;  %1256 = vmatpush3.bf16.msra.mxu1 %v1296_v53 }
 0xdc7   :  { %1257 = vmatprep.subr.bf16.mxu1 %v1432_v1 }
 0xdc8   :  { %844 = vrot.lane.b32.xlu1 %v838_v30, %s1434_s12  ;;  %v498_v30 = vsel %vm495_vm7, %v1635_v47, 0.0 }
 0xdca   :  { %1258 = vmatpush3.bf16.msra.mxu1 %v1297_v54 }
 0xe3a   :  { %v845_v31 = vpop.permute.xlu1 %844 }
 0xe3b   :  { %1252 = vmatmul.mubr.msk.bf16.vlgmr.msra.gmra.mrb[16].mxu0 %vm30_vm0, %v845_v31  ;;  %v720_v31 = vsel %vm717_vm11, %v1695_v52, 0.0 }
 0xf0e   :  { %v895_v12 = vpop.f32.mrb[16].mxu0 }
 0xf0f   :  { %v903_v33 = vadd.f32 %v895_v12, %v156_v32  ;;  %v1253_v34 = vpop.f32.mrb[17].mxu0 }
 0xf10   :  { %v898_v35 = vpop.f32.mrb[18].mxu0 }
 0xf11   :  { %v1152_v17 = vmul.f32 -1.442695, %v903_v33  ;;  %1346 = vtanh.f32 %v903_v33  ;;  %v1254_v36 = vpop.f32.mrb[19].mxu0 }
 0xf13   :  { %1348 = vpow2.f32 %v1152_v17 }
 0xf1b   :  { %v1347_v37 = vpop.eup %1346 }
 0xf1c   :  { %912 = vrot.lane.b32.xlu1 %v1347_v37, %s1436_s15 }
 0xf1d   :  { %v1349_v39 = vpop.eup %1348 }
 0xf1e   :  { %v907_v41 = vadd.f32 1.0, %v1349_v39 }
 0xf20   :  { %1350 = vrcp.f32 %v907_v41  ;;  %937 = vperm.xlu1 %1274, %v935_v40  }
 0xf2a   :  { %v1351_v15 = vpop.eup %1350 }
 0xf2b   :  { %v920_v45 = vmul.f32 %v1351_v15, %v918_v44 }
 0xf2d   :  { %922 = vrot.lane.b32.xlu0 %v920_v45, %s1437_s17 }
 0xf8e   :  { %v913_v46 = vpop.permute.xlu1 %912 }
 0xf8f   :  { %v915_v49 = vmul.f32 %v1351_v15, %v913_v46 }
 0xf9f   :  { %v923_v50 = vpop.permute.xlu0 %922  ;;  %v1744_v55 = vpop.permute.xlu1 %937 }
 0xfa0   :  { %v925_v51 = vadd.f32 %v923_v50, %v915_v49  ;;  %vm939_vm15 = vcmp.eq.s32.totalorder %v1744_v55, 1 }
 0xfa2   :  { %1352 = vtanh.f32 %v925_v51  ;;  %v940_v57 = vsel %vm939_vm15, %v925_v51, %v829_v25 }
 0xfac   :  { %v1353_v56 = vpop.eup %1352 }
 0xfad   :  { %928 = vrot.lane.b32.xlu0 %v1353_v56, %s1437_s17 }
 0xfb1   :  { %1028 = vrot.lane.b32.xlu0 %v940_v57, %s1434_s12 }
0x101f   :  { %v929_v58 = vpop.permute.xlu0 %928 }
0x1020   :  { %v931_v59 = vmul.f32 %v1351_v15, %v929_v58 }
0x1022   :  { %v941_v60 = vsel %vm939_vm15, %v931_v59, %v830_v29  ;;  %v277_v29 = vsel %vm270_vm3, %v1554_v42, 0.0  ;;  %v942_v32 = vsel %vm939_vm15, %v931_v59, 0.0 }
0x1023   :  { %v949_v61 = vpack.c.bf16 %v941_v60, %v941_v60  ;;  %v1029_v14 = vpop.permute.xlu0 %1028 }
0x1025   :  { %955 = vrot.lane.b32.xlu1 %v949_v61, %s1434_s12 }
0x1097   :  { %v956_v1 = vpop.permute.xlu1 %955 }
0x1098   :  { %1260 = vmatmul.mubr.msk.bf16.vlgmr.msra.gmra.mrb[16].mxu1 %vm30_vm0, %v956_v1 }
0x116b   :  { %v1006_v62 = vpop.f32.mrb[16].mxu1 }
0x116c   :  { %v1014_v0 = vadd.f32 %v1006_v62, %v159_v16  ;;  %v1261_v2 = vpop.f32.mrb[17].mxu1 }
0x116d   :  { %v1009_v3 = vpop.f32.mrb[18].mxu1 }
0x116e   :  { %v1156_v19 = vmul.f32 -1.442695, %v1014_v0  ;;  %1354 = vtanh.f32 %v1014_v0  ;;  %v1262_v4 = vpop.f32.mrb[19].mxu1 }
0x1170   :  { %1356 = vpow2.f32 %v1156_v19 }
0x1178   :  { %v1355_v5 = vpop.eup %1354 }
0x1179   :  { %1023 = vrot.lane.b32.xlu1 %v1355_v5, %s1436_s15  ;;  %s1089_s15 = sshll.u32 %s1438_s3, 4  ;;  %s1090_s15 = int_to_ptr.vmem [resolvable:$true] %s1089_s15 }
0x117a   :  { %v1357_v6 = vpop.eup %1356  ;;  %p1367_p1 = scmp.lt.s32.totalorder %s1090_s15, %s1090_s15 }
0x117b   :  { %v1018_v13 = vadd.f32 1.0, %v1357_v6 }
0x117d   :  { %1358 = vrcp.f32 %v1018_v13  ;;  %1048 = vperm.xlu1 %1274, %v1046_v7  }
0x1181   :  { %389 = vrot.lane.b32.xlu1 %v387_v11, %s1434_s12 }
0x1185   :  { %611 = vrot.lane.b32.xlu1 %v609_v18, %s1434_s12 }
0x1187   :  { %v1359_v27 = vpop.eup %1358 }
0x1188   :  { %v1031_v20 = vmul.f32 %v1359_v27, %v1029_v14 }
0x1189   :  { %833 = vrot.lane.b32.xlu1 %v831_v10, %s1434_s12 }
0x118a   :  { %1033 = vrot.lane.b32.xlu0 %v1031_v20, %s1437_s17 }
0x11eb   :  { %v1024_v63 = vpop.permute.xlu1 %1023 }
0x11ec   :  { %v1026_v9 = vmul.f32 %v1359_v27, %v1024_v63 }
0x11fc   :  { %v1049_v22 = vpop.permute.xlu1 %1048  ;;  %v1034_v24 = vpop.permute.xlu0 %1033 }
0x11fd   :  { %vm1050_vm2 = vcmp.eq.s32.totalorder %v1049_v22, 1  ;;  %v1036_v8 = vadd.f32 %v1034_v24, %v1026_v9 }
0x11ff   :  { %1360 = vtanh.f32 %v1036_v8  ;;  %v1051_v21 = vsel %vm1050_vm2, %v1036_v8, %v940_v57 }
0x1200   :  { %v390_v25 = vpop.permute.xlu1 %389  ;;  %1065 = vst.msk [vmem:[#allocation4] sm:$0xff] %vm30_vm0, %v1051_v21  ;;  %1070 = vst.msk [vmem:[#allocation9] sm:$0xff] %vm30_vm0, %v1051_v21 }
0x1201   :  { %393 = vst.msk [vmem:[#allocation5 + $0x8] sm:$0xff] %vm30_vm0, %v390_v25 }
0x1204   :  { %v612_v23 = vpop.permute.xlu1 %611 }
0x1205   :  { %615 = vst.msk [vmem:[#allocation5 + $0x18] sm:$0xff] %vm30_vm0, %v612_v23 }
0x1208   :  { %v834_v26 = vpop.permute.xlu1 %833 }
0x1209   :  { %v1361_v28 = vpop.eup %1360  ;;  %837 = vst.msk [vmem:[#allocation5 + $0x28] sm:$0xff] %vm30_vm0, %v834_v26 }
0x120a   :  { %1039 = vrot.lane.b32.xlu0 %v1361_v28, %s1437_s17  ;;  %s1439_s17 = smov [#allocation5]  }
0x120b   :  { %s1076_s25 = sshll.u32 %s1439_s17, 4  ;;  %s1803_s25 = int_to_ptr.vmem [resolvable:$true] %s1076_s25 }
0x120e   :  { %279 = vrot.lane.b32.xlu0 %v277_v29, %s1434_s12 }
0x1212   :  { %500 = vrot.lane.b32.xlu0 %v498_v30, %s1434_s12 }
0x1216   :  { %722 = vrot.lane.b32.xlu0 %v720_v31, %s1434_s12 }
0x121a   :  { %944 = vrot.lane.b32.xlu0 %v942_v32, %s1434_s12 }
0x127c   :  { %v1040_v38 = vpop.permute.xlu0 %1039 }
0x127d   :  { %v1042_v42 = vmul.f32 %v1359_v27, %v1040_v38 }
0x127f   :  { %v1052_v12 = vsel %vm1050_vm2, %v1042_v42, %v941_v60  ;;  %v1053_v47 = vsel %vm1050_vm2, %v1042_v42, 0.0 }
0x1280   :  { %1061 = vrot.lane.b32.xlu1 %v1052_v12, %s1434_s12  ;;  %v280_v43 = vpop.permute.xlu0 %279 }
0x1281   :  { %282 = vst.msk [vmem:[#allocation5] sm:$0xff] %vm30_vm0, %v280_v43 }
0x1284   :  { %1055 = vrot.lane.b32.xlu1 %v1053_v47, %s1434_s12  ;;  %v501_v48 = vpop.permute.xlu0 %500  ;;  %s1362_s12 = scalar_lea.vmem %s1090_s15, 128 }
0x1285   :  { %504 = vst.msk [vmem:[#allocation5 + $0x10] sm:$0xff] %vm30_vm0, %v501_v48  ;;  %p1363_p0 = scmp.ne.s32.totalorder %s1090_s15, %s1362_s12  ;;  %p1368_p2 = scmp.lt.s32.totalorder %s1362_s12, %s1362_s12 }
0x1287   :  { %p1369_p3 = por %p1368_p2, %p1367_p1 }
0x1288   :  { %v723_v52 = vpop.permute.xlu0 %722 }
0x1289   :  { %726 = vst.msk [vmem:[#allocation5 + $0x20] sm:$0xff] %vm30_vm0, %v723_v52  ;;  %p1370_p4 = pnand %p1369_p3, %p1363_p0 }
0x128c   :  { %v945_v33 = vpop.permute.xlu0 %944 }
0x128d   :  { %948 = vst.msk [vmem:[#allocation5 + $0x30] sm:$0xff] %vm30_vm0, %v945_v33 }
0x12f2   :  { %v1062_v34 = vpop.permute.xlu1 %1061 }
0x12f3   :  { %1064 = vst.msk [vmem:[#allocation3] sm:$0xff] %vm30_vm0, %v1062_v34  ;;  %1069 = vst.msk [vmem:[#allocation7] sm:$0xff] %vm30_vm0, %v1062_v34 }
0x12f4   :  { %1373 = shalt.err (!%p1370_p4)
}
0x12f5   :  { %s1374_s29 = scalar_lea.hbm %s1855_s6, 128 }
0x12f6   :  { %p1375_p5 = scmp.ne.s32.totalorder %s1855_s6, %s1374_s29  ;;  %p1378_p6 = scmp.lt.u32.totalorder %s1374_s29, %s1855_s6 }
0x12f8   :  { %p1380_p7 = pnand %p1378_p6, %p1375_p5 }
0x12fa   :  { %1383 = shalt.err (!%p1380_p7)
}
0x12fb   :  { %1092 = dma.vmem_to_hbm [thread:$0]  %s1090_s15, 128, %s1855_s6, [#allocation8]  }
0x12fc   :  { %s1384_s13 = scalar_lea.vmem %s1100_s27, 128  ;;  %p1389_p9 = scmp.lt.s32.totalorder %s1100_s27, %s1100_s27 }
0x12fd   :  { %p1385_p8 = scmp.ne.s32.totalorder %s1100_s27, %s1384_s13  ;;  %p1390_p10 = scmp.lt.s32.totalorder %s1384_s13, %s1384_s13 }
0x12ff   :  { %p1391_p11 = por %p1390_p10, %p1389_p9 }
0x1301   :  { %p1392_p12 = pnand %p1391_p11, %p1385_p8 }
0x1303   :  { %1395 = shalt.err (!%p1392_p12)
}
0x1304   :  { %s1396_s16 = scalar_lea.hbm %s1856_s7, 128 }
0x1305   :  { %p1397_p13 = scmp.ne.s32.totalorder %s1856_s7, %s1396_s16  ;;  %p1400_p0 = scmp.lt.u32.totalorder %s1396_s16, %s1856_s7 }
0x1307   :  { %p1402_p1 = pnand %p1400_p0, %p1397_p13 }
0x1309   :  { %1405 = shalt.err (!%p1402_p1)
}
0x130a   :  { %1102 = dma.vmem_to_hbm [thread:$0]  %s1100_s27, 128, %s1856_s7, [#allocation8]   ;;  %v1056_v35 = vpop.permute.xlu1 %1055 }
0x130b   :  { %1059 = vst.msk [vmem:[#allocation5 + $0x38] sm:$0xff] %vm30_vm0, %v1056_v35  ;;  %s1406_s22 = scalar_lea.vmem %s1803_s25, 1024  ;;  %p1411_p3 = scmp.lt.s32.totalorder %s1803_s25, %s1803_s25 }
0x130c   :  { %p1407_p2 = scmp.ne.s32.totalorder %s1803_s25, %s1406_s22  ;;  %p1412_p4 = scmp.lt.s32.totalorder %s1406_s22, %s1406_s22 }
0x130e   :  { %p1413_p5 = por %p1412_p4, %p1411_p3 }
0x1310   :  { %p1414_p6 = pnand %p1413_p5, %p1407_p2 }
0x1312   :  { %1417 = shalt.err (!%p1414_p6)
}
0x1313   :  { %s1418_s3 = scalar_lea.hbm %s1854_s5, 1024 }
0x1314   :  { %p1419_p7 = scmp.ne.s32.totalorder %s1854_s5, %s1418_s3  ;;  %p1422_p8 = scmp.lt.u32.totalorder %s1418_s3, %s1854_s5 }
0x1316   :  { %p1424_p9 = pnand %p1422_p8, %p1419_p7 }
0x1318   :  { %1427 = shalt.err (!%p1424_p9)
}
0x1319   :  { %s1441_s27 = smov 128   ;;  %s1442_s12 = smov 8  }
0x131a   :  { %1082 = dma.vmem_to_hbm [thread:$0]  %s1803_s25, 1024, %s1854_s5, [#allocation6], %s1441_s27, %s1441_s27, %s1442_s12  }
0x131b   :  { %1428 = dma.done.wait [#allocation6], 1024  }
0x131c   :  { %1429 = vsyncadd [#allocation6], 4294966272 }
0x131d   :  { %1430 = dma.done.wait [#allocation8], 256  }
0x131e   :  { %1431 = vsyncadd [#allocation8], 4294967040 }
0x131f   :  { %1112 = vsyncpa [#allocation6], 1 }
0x1320   :  { %1113 = vsyncpa [#allocation8], 1 }

</bundles_post_ra>
